<compile_context>
chip_gen: v7x
topology: tpu7x:2x2x1
jax: 0.10.0
libtpu: 0.0.40
codegen_flags: <defaults>
</compile_context>

<pallas_src>
import jax
import jax.numpy as jnp
import numpy as np
from jax.experimental import pallas as pl
from jax.experimental.pallas import tpu as pltpu


def _encoder_kernel(x_ref, ai_ref,
                    w_ah_ref, b_ah_ref,
                    w_a_ref, b_a_ref,
                    w_lstm_ref, b_lstm_ref,
                    ow_ref, oe_ref):
    B, T, D = x_ref.shape
    H = w_lstm_ref.shape[1] // 4

    # Load everything once; all operands live in VMEM for the whole kernel.
    x = x_ref[...]                      # (B, T, D)   full sequence
    ai_col = ai_ref[...][:, :, None]    # (B, D, 1)   time-invariant attn-input term
    w_ah = w_ah_ref[...]                # (2H, T)
    b_ah = b_ah_ref[...]                # (1, T)
    w_a = w_a_ref[...][None, :, :]      # (1, 1, T)   broadcast hoisted out of loop
    b_a = b_a_ref[...]                  # (1, 1)
    w_lstm = w_lstm_ref[...]            # (D+H, 4H)
    b_lstm = b_lstm_ref[...]            # (1, 4H)

    h = jnp.zeros((B, H), jnp.float32)
    c = jnp.zeros((B, H), jnp.float32)
    w_steps = []
    h_steps = []

    # T is a small compile-time constant: fully unroll the recurrence.
    for t in range(T):
        # ---- input attention (softmax over the D input features) ------------
        hc = jnp.concatenate([h, c], axis=-1)                                # (B, 2H)
        y = jnp.dot(hc, w_ah, preferred_element_type=jnp.float32) + b_ah     # (B, T)
        z = jnp.tanh(y[:, None, :] + ai_col)                                 # (B, D, T)
        e = jnp.sum(z * w_a, axis=-1) + b_a                                  # (B, D)
        e = e - jnp.max(e, axis=-1, keepdims=True)
        p = jnp.exp(e)
        attn = p * pl.reciprocal(jnp.sum(p, axis=-1, keepdims=True), approx=True)
        w_in = attn * x[:, t, :]                                             # (B, D)

        # ---- one LSTM step (PyTorch gate order: i, f, g, o) ------------------
        gates = (jnp.dot(jnp.concatenate([w_in, h], axis=-1), w_lstm,
                         preferred_element_type=jnp.float32) + b_lstm)        # (B, 4H)
        i_g = jax.nn.sigmoid(gates[:, 0 * H:1 * H])
        f_g = jax.nn.sigmoid(gates[:, 1 * H:2 * H])
        g_g = jnp.tanh(gates[:, 2 * H:3 * H])
        o_g = jax.nn.sigmoid(gates[:, 3 * H:4 * H])
        c = f_g * c + i_g * g_g
        h = o_g * jnp.tanh(c)

        w_steps.append(w_in)
        h_steps.append(h)

    # Single lane-dense bulk store per output (one HBM write-back DMA each).
    ow_ref[...] = jnp.concatenate(w_steps, axis=-1)    # (B, T*D)
    oe_ref[...] = jnp.concatenate(h_steps, axis=-1)    # (B, T*H)


def encoder_forward(x, params):
    """x: (B, T, D) float32. Returns (input_weighted (B,T,D), input_encoded (B,T,H))."""
    B, T, D = x.shape
    H = params["lstm_w_hh"].shape[1]
    x = x.astype(jnp.float32)

    # Time-invariant attn_layer_input term, hoisted out of the recurrence:
    # ai[b, d] = sum_t x[b, t, d] * w_ai[t] + b_ai
    ai = (jnp.einsum("btd,t->bd", x, params["attn_input_w"].reshape(T))
          + params["attn_input_b"][0]).astype(jnp.float32)

    # Re-lay parameters for the kernel (right-multiply orientation, fused dots).
    w_ah = jnp.transpose(params["attn_hidden_w"])                  # (2H, T), cat(h, c) order
    b_ah = params["attn_hidden_b"].reshape(1, T)
    w_a = params["attn_w"].reshape(1, T)
    b_a = params["attn_b"].reshape(1, 1)
    w_lstm = jnp.concatenate([jnp.transpose(params["lstm_w_ih"]),  # (D, 4H)
                              jnp.transpose(params["lstm_w_hh"])], # (H, 4H)
                             axis=0)                               # (D+H, 4H)
    b_lstm = (params["lstm_b_ih"] + params["lstm_b_hh"]).reshape(1, 4 * H)

    def full(shape):
        n = len(shape)
        return pl.BlockSpec(shape, lambda i, _n=n: (0,) * _n)

    grid_spec = pltpu.PrefetchScalarGridSpec(
        num_scalar_prefetch=0,
        grid=(1,),                                   # single invocation; loop is in-kernel
        in_specs=[
            full((B, T, D)),                         # x
            full((B, D)),                            # hoisted attn-input term
            full((2 * H, T)), full((1, T)),          # fused attn_layer_hidden
            full((1, T)), full((1, 1)),              # attn_layer
            full((D + H, 4 * H)), full((1, 4 * H)),  # fused LSTM weights / bias
        ],
        out_specs=[
            full((B, T * D)),                        # input_weighted (flat, lane-dense)
            full((B, T * H)),                        # input_encoded  (flat, lane-dense)
        ],
    )
    out_shapes = (jax.ShapeDtypeStruct((B, T * D), jnp.float32),
                  jax.ShapeDtypeStruct((B, T * H), jnp.float32))

    ow, oe = pl.pallas_call(
        _encoder_kernel,
        grid_spec=grid_spec,
        out_shape=out_shapes,
        compiler_params=pltpu.CompilerParams(dimension_semantics=("arbitrary",)),
    )(x, ai, w_ah, b_ah, w_a, b_a, w_lstm, b_lstm)

    return ow.reshape(B, T, D), oe.reshape(B, T, H)


def encoder_reference(x, params):
    """Pure-JAX mirror of the PyTorch forward, for verification."""
    B, T, D = x.shape
    H = params["lstm_w_hh"].shape[1]
    h = jnp.zeros((B, H), jnp.float32)
    c = jnp.zeros((B, H), jnp.float32)
    x_bdt = jnp.transpose(x, (0, 2, 1))
    iw, ie = [], []
    for t in range(T):
        hc = jnp.concatenate([h, c], axis=-1)
        y = hc @ params["attn_hidden_w"].T + params["attn_hidden_b"]                # (B, T)
        ai = x_bdt @ params["attn_input_w"].reshape(T) + params["attn_input_b"][0]  # (B, D)
        z = jnp.tanh(y[:, None, :] + ai[:, :, None])
        e = z @ params["attn_w"].reshape(T) + params["attn_b"][0]
        attn = jax.nn.softmax(e, axis=-1)
        w_in = attn * x[:, t, :]
        gates = (w_in @ params["lstm_w_ih"].T + h @ params["lstm_w_hh"].T
                 + params["lstm_b_ih"] + params["lstm_b_hh"])
        i_g = jax.nn.sigmoid(gates[:, :H])
        f_g = jax.nn.sigmoid(gates[:, H:2 * H])
        g_g = jnp.tanh(gates[:, 2 * H:3 * H])
        o_g = jax.nn.sigmoid(gates[:, 3 * H:])
        c = f_g * c + i_g * g_g
        h = o_g * jnp.tanh(c)
        iw.append(w_in)
        ie.append(h)
    return jnp.stack(iw, axis=1), jnp.stack(ie, axis=1)


if __name__ == "__main__":
    # opt.input_size = 4, opt.encoder_hidden_size = 32, opt.T = 8, batch = 2
    B, T, D, H = 2, 8, 4, 32
    key = jax.random.PRNGKey(0)
    ks = jax.random.split(key, 11)

    def uni(k, shape, fan_in):
        bound = 1.0 / np.sqrt(fan_in)
        return jax.random.uniform(k, shape, jnp.float32, -bound, bound)

    params = {
        "attn_hidden_w": uni(ks[0], (T, 2 * H), 2 * H),     # nn.Linear(2H, T)
        "attn_hidden_b": uni(ks[1], (T,), 2 * H),
        "attn_input_w": uni(ks[2], (1, T), T),              # nn.Linear(T, 1)
        "attn_input_b": uni(ks[3], (1,), T),
        "attn_w": uni(ks[4], (1, T), T),                    # nn.Linear(T, 1)
        "attn_b": uni(ks[5], (1,), T),
        "lstm_w_ih": uni(ks[6], (4 * H, D), H),             # nn.LSTM(D, H)
        "lstm_w_hh": uni(ks[7], (4 * H, H), H),
        "lstm_b_ih": uni(ks[8], (4 * H,), H),
        "lstm_b_hh": uni(ks[9], (4 * H,), H),
    }
    x = jax.random.normal(ks[10], (B, T, D), jnp.float32)

    input_weighted, input_encoded = encoder_forward(x, params)
    jax.block_until_ready((input_weighted, input_encoded))

    ref_w, ref_e = encoder_reference(x, params)
    assert input_weighted.shape == (B, T, D) and input_encoded.shape == (B, T, H)
    assert np.allclose(np.asarray(input_weighted), np.asarray(ref_w), atol=2e-3, rtol=2e-3)
    assert np.allclose(np.asarray(input_encoded), np.asarray(ref_e), atol=2e-3, rtol=2e-3)

    print("KERNEL_OK")
</pallas_src>

<mosaic_0001>
module attributes {stable_mosaic.version = 11 : i64} {
  func.func @_encoder_kernel(%arg0: i32, %arg1: memref<2x8x4xf32, #tpu.memory_space<vmem>>, %arg2: memref<2x4xf32, #tpu.memory_space<vmem>>, %arg3: memref<64x8xf32, #tpu.memory_space<vmem>>, %arg4: memref<1x8xf32, #tpu.memory_space<vmem>>, %arg5: memref<1x8xf32, #tpu.memory_space<vmem>>, %arg6: memref<1x1xf32, #tpu.memory_space<vmem>>, %arg7: memref<36x128xf32, #tpu.memory_space<vmem>>, %arg8: memref<1x128xf32, #tpu.memory_space<vmem>>, %arg9: memref<2x32xf32, #tpu.memory_space<vmem>>, %arg10: memref<2x256xf32, #tpu.memory_space<vmem>>) attributes {dimension_semantics = [#tpu.dimension_semantics<arbitrary>], iteration_bounds = array<i64: 1>, scalar_prefetch = 0 : i64, scratch_operands = 0 : i64, tpu.core_type = #tpu.core_type<tc>, window_params = [{pipeline_mode = #tpu.pipeline_mode<synchronous>, transform_indices = @transform_0, window_bounds = array<i64: 2, 8, 4>}, {pipeline_mode = #tpu.pipeline_mode<synchronous>, transform_indices = @transform_1, window_bounds = array<i64: 2, 4>}, {pipeline_mode = #tpu.pipeline_mode<synchronous>, transform_indices = @transform_2, window_bounds = array<i64: 64, 8>}, {pipeline_mode = #tpu.pipeline_mode<synchronous>, transform_indices = @transform_3, window_bounds = array<i64: 1, 8>}, {pipeline_mode = #tpu.pipeline_mode<synchronous>, transform_indices = @transform_4, window_bounds = array<i64: 1, 8>}, {pipeline_mode = #tpu.pipeline_mode<synchronous>, transform_indices = @transform_5, window_bounds = array<i64: 1, 1>}, {pipeline_mode = #tpu.pipeline_mode<synchronous>, transform_indices = @transform_6, window_bounds = array<i64: 36, 128>}, {pipeline_mode = #tpu.pipeline_mode<synchronous>, transform_indices = @transform_7, window_bounds = array<i64: 1, 128>}, {pipeline_mode = #tpu.pipeline_mode<synchronous>, transform_indices = @transform_8, window_bounds = array<i64: 2, 32>}, {pipeline_mode = #tpu.pipeline_mode<synchronous>, transform_indices = @transform_9, window_bounds = array<i64: 2, 256>}]} {
    %c0 = arith.constant 0 : index
    %c0_0 = arith.constant 0 : index
    %c0_1 = arith.constant 0 : index
    %0 = vector.load %arg1[%c0, %c0_0, %c0_1] : memref<2x8x4xf32, #tpu.memory_space<vmem>>, vector<2x8x4xf32>
    %c0_2 = arith.constant 0 : index
    %c0_3 = arith.constant 0 : index
    %1 = vector.load %arg2[%c0_2, %c0_3] : memref<2x4xf32, #tpu.memory_space<vmem>>, vector<2x4xf32>
    %2 = vector.shape_cast %1 : vector<2x4xf32> to vector<2x4x1xf32>
    %c0_4 = arith.constant 0 : index
    %c0_5 = arith.constant 0 : index
    %3 = vector.load %arg3[%c0_4, %c0_5] : memref<64x8xf32, #tpu.memory_space<vmem>>, vector<64x8xf32>
    %c0_6 = arith.constant 0 : index
    %c0_7 = arith.constant 0 : index
    %4 = vector.load %arg4[%c0_6, %c0_7] : memref<1x8xf32, #tpu.memory_space<vmem>>, vector<1x8xf32>
    %c0_8 = arith.constant 0 : index
    %c0_9 = arith.constant 0 : index
    %5 = vector.load %arg5[%c0_8, %c0_9] : memref<1x8xf32, #tpu.memory_space<vmem>>, vector<1x8xf32>
    %6 = vector.shape_cast %5 : vector<1x8xf32> to vector<1x1x8xf32>
    %c0_10 = arith.constant 0 : index
    %c0_11 = arith.constant 0 : index
    %7 = vector.load %arg6[%c0_10, %c0_11] : memref<1x1xf32, #tpu.memory_space<vmem>>, vector<1x1xf32>
    %c0_12 = arith.constant 0 : index
    %c0_13 = arith.constant 0 : index
    %8 = vector.load %arg7[%c0_12, %c0_13] : memref<36x128xf32, #tpu.memory_space<vmem>>, vector<36x128xf32>
    %c0_14 = arith.constant 0 : index
    %c0_15 = arith.constant 0 : index
    %9 = vector.load %arg8[%c0_14, %c0_15] : memref<1x128xf32, #tpu.memory_space<vmem>>, vector<1x128xf32>
    %cst = arith.constant 0.000000e+00 : f32
    %10 = vector.broadcast %cst : f32 to vector<2x32xf32>
    %cst_16 = arith.constant 0.000000e+00 : f32
    %11 = vector.broadcast %cst_16 : f32 to vector<2x32xf32>
    %12 = tpu.concatenate %10, %11 in 1 : vector<2x32xf32>, vector<2x32xf32> -> vector<2x64xf32>
    %cst_17 = arith.constant dense<0.000000e+00> : vector<2x8xf32>
    %13 = tpu.matmul %12, %3, %cst_17 {dimension_numbers = #tpu.dot_dimension_numbers<[1], [0], [0], [1], [0, 0, 1, 1], [], []>} : vector<2x64xf32>, vector<64x8xf32>, vector<2x8xf32> -> vector<2x8xf32>
    %14 = vector.broadcast %4 : vector<1x8xf32> to vector<2x8xf32>
    %15 = arith.addf %13, %14 : vector<2x8xf32>
    %16 = vector.shape_cast %15 : vector<2x8xf32> to vector<2x1x8xf32>
    %17 = vector.broadcast %16 : vector<2x1x8xf32> to vector<2x4x8xf32>
    %18 = vector.broadcast %2 : vector<2x4x1xf32> to vector<2x4x8xf32>
    %19 = arith.addf %17, %18 : vector<2x4x8xf32>
    %20 = math.tanh %19 : vector<2x4x8xf32>
    %21 = vector.broadcast %6 : vector<1x1x8xf32> to vector<2x4x8xf32>
    %22 = arith.mulf %20, %21 : vector<2x4x8xf32>
    %cst_18 = arith.constant dense<0.000000e+00> : vector<2x4xf32>
    %23 = vector.multi_reduction <add>, %22, %cst_18 [2] : vector<2x4x8xf32> to vector<2x4xf32>
    %24 = vector.broadcast %7 : vector<1x1xf32> to vector<2x4xf32>
    %25 = arith.addf %23, %24 : vector<2x4xf32>
    %cst_19 = arith.constant dense<0xFF800000> : vector<2xf32>
    %26 = vector.multi_reduction <maximumf>, %25, %cst_19 [1] : vector<2x4xf32> to vector<2xf32>
    %27 = vector.shape_cast %26 : vector<2xf32> to vector<2x1xf32>
    %28 = vector.broadcast %27 : vector<2x1xf32> to vector<2x4xf32>
    %29 = arith.subf %25, %28 : vector<2x4xf32>
    %30 = math.exp %29 : vector<2x4xf32>
    %cst_20 = arith.constant dense<0.000000e+00> : vector<2xf32>
    %31 = vector.multi_reduction <add>, %30, %cst_20 [1] : vector<2x4xf32> to vector<2xf32>
    %32 = vector.shape_cast %31 : vector<2xf32> to vector<2x1xf32>
    %33 = tpu.reciprocal %32 {approx = true} : vector<2x1xf32> -> vector<2x1xf32>
    %34 = vector.broadcast %33 : vector<2x1xf32> to vector<2x4xf32>
    %35 = arith.mulf %30, %34 : vector<2x4xf32>
    %36 = vector.extract_strided_slice %0 {offsets = [0, 0, 0], sizes = [2, 1, 4], strides = [1, 1, 1]} : vector<2x8x4xf32> to vector<2x1x4xf32>
    %37 = vector.shape_cast %36 : vector<2x1x4xf32> to vector<2x4xf32>
    %38 = arith.mulf %35, %37 : vector<2x4xf32>
    %39 = tpu.concatenate %38, %10 in 1 : vector<2x4xf32>, vector<2x32xf32> -> vector<2x36xf32>
    %cst_21 = arith.constant dense<0.000000e+00> : vector<2x128xf32>
    %40 = tpu.matmul %39, %8, %cst_21 {dimension_numbers = #tpu.dot_dimension_numbers<[1], [0], [0], [1], [0, 0, 1, 1], [], []>} : vector<2x36xf32>, vector<36x128xf32>, vector<2x128xf32> -> vector<2x128xf32>
    %41 = vector.broadcast %9 : vector<1x128xf32> to vector<2x128xf32>
    %42 = arith.addf %40, %41 : vector<2x128xf32>
    %43 = vector.extract_strided_slice %42 {offsets = [0, 0], sizes = [2, 32], strides = [1, 1]} : vector<2x128xf32> to vector<2x32xf32>
    %44 = arith.negf %43 : vector<2x32xf32>
    %45 = math.exp %44 : vector<2x32xf32>
    %cst_22 = arith.constant 1.000000e+00 : f32
    %46 = vector.broadcast %cst_22 : f32 to vector<2x32xf32>
    %47 = arith.addf %46, %45 : vector<2x32xf32>
    %48 = arith.divf %46, %47 : vector<2x32xf32>
    %49 = vector.extract_strided_slice %42 {offsets = [0, 32], sizes = [2, 32], strides = [1, 1]} : vector<2x128xf32> to vector<2x32xf32>
    %50 = arith.negf %49 : vector<2x32xf32>
    %51 = math.exp %50 : vector<2x32xf32>
    %cst_23 = arith.constant 1.000000e+00 : f32
    %52 = vector.broadcast %cst_23 : f32 to vector<2x32xf32>
    %53 = arith.addf %52, %51 : vector<2x32xf32>
    %54 = arith.divf %52, %53 : vector<2x32xf32>
    %55 = vector.extract_strided_slice %42 {offsets = [0, 64], sizes = [2, 32], strides = [1, 1]} : vector<2x128xf32> to vector<2x32xf32>
    %56 = math.tanh %55 : vector<2x32xf32>
    %57 = vector.extract_strided_slice %42 {offsets = [0, 96], sizes = [2, 32], strides = [1, 1]} : vector<2x128xf32> to vector<2x32xf32>
    %58 = arith.negf %57 : vector<2x32xf32>
    %59 = math.exp %58 : vector<2x32xf32>
    %cst_24 = arith.constant 1.000000e+00 : f32
    %60 = vector.broadcast %cst_24 : f32 to vector<2x32xf32>
    %61 = arith.addf %60, %59 : vector<2x32xf32>
    %62 = arith.divf %60, %61 : vector<2x32xf32>
    %63 = arith.mulf %54, %11 : vector<2x32xf32>
    %64 = arith.mulf %48, %56 : vector<2x32xf32>
    %65 = arith.addf %63, %64 : vector<2x32xf32>
    %66 = math.tanh %65 : vector<2x32xf32>
    %67 = arith.mulf %62, %66 : vector<2x32xf32>
    %68 = tpu.concatenate %67, %65 in 1 : vector<2x32xf32>, vector<2x32xf32> -> vector<2x64xf32>
    %cst_25 = arith.constant dense<0.000000e+00> : vector<2x8xf32>
    %69 = tpu.matmul %68, %3, %cst_25 {dimension_numbers = #tpu.dot_dimension_numbers<[1], [0], [0], [1], [0, 0, 1, 1], [], []>} : vector<2x64xf32>, vector<64x8xf32>, vector<2x8xf32> -> vector<2x8xf32>
    %70 = vector.broadcast %4 : vector<1x8xf32> to vector<2x8xf32>
    %71 = arith.addf %69, %70 : vector<2x8xf32>
    %72 = vector.shape_cast %71 : vector<2x8xf32> to vector<2x1x8xf32>
    %73 = vector.broadcast %72 : vector<2x1x8xf32> to vector<2x4x8xf32>
    %74 = vector.broadcast %2 : vector<2x4x1xf32> to vector<2x4x8xf32>
    %75 = arith.addf %73, %74 : vector<2x4x8xf32>
    %76 = math.tanh %75 : vector<2x4x8xf32>
    %77 = vector.broadcast %6 : vector<1x1x8xf32> to vector<2x4x8xf32>
    %78 = arith.mulf %76, %77 : vector<2x4x8xf32>
    %cst_26 = arith.constant dense<0.000000e+00> : vector<2x4xf32>
    %79 = vector.multi_reduction <add>, %78, %cst_26 [2] : vector<2x4x8xf32> to vector<2x4xf32>
    %80 = vector.broadcast %7 : vector<1x1xf32> to vector<2x4xf32>
    %81 = arith.addf %79, %80 : vector<2x4xf32>
    %cst_27 = arith.constant dense<0xFF800000> : vector<2xf32>
    %82 = vector.multi_reduction <maximumf>, %81, %cst_27 [1] : vector<2x4xf32> to vector<2xf32>
    %83 = vector.shape_cast %82 : vector<2xf32> to vector<2x1xf32>
    %84 = vector.broadcast %83 : vector<2x1xf32> to vector<2x4xf32>
    %85 = arith.subf %81, %84 : vector<2x4xf32>
    %86 = math.exp %85 : vector<2x4xf32>
    %cst_28 = arith.constant dense<0.000000e+00> : vector<2xf32>
    %87 = vector.multi_reduction <add>, %86, %cst_28 [1] : vector<2x4xf32> to vector<2xf32>
    %88 = vector.shape_cast %87 : vector<2xf32> to vector<2x1xf32>
    %89 = tpu.reciprocal %88 {approx = true} : vector<2x1xf32> -> vector<2x1xf32>
    %90 = vector.broadcast %89 : vector<2x1xf32> to vector<2x4xf32>
    %91 = arith.mulf %86, %90 : vector<2x4xf32>
    %92 = vector.extract_strided_slice %0 {offsets = [0, 1, 0], sizes = [2, 1, 4], strides = [1, 1, 1]} : vector<2x8x4xf32> to vector<2x1x4xf32>
    %93 = vector.shape_cast %92 : vector<2x1x4xf32> to vector<2x4xf32>
    %94 = arith.mulf %91, %93 : vector<2x4xf32>
    %95 = tpu.concatenate %94, %67 in 1 : vector<2x4xf32>, vector<2x32xf32> -> vector<2x36xf32>
    %cst_29 = arith.constant dense<0.000000e+00> : vector<2x128xf32>
    %96 = tpu.matmul %95, %8, %cst_29 {dimension_numbers = #tpu.dot_dimension_numbers<[1], [0], [0], [1], [0, 0, 1, 1], [], []>} : vector<2x36xf32>, vector<36x128xf32>, vector<2x128xf32> -> vector<2x128xf32>
    %97 = vector.broadcast %9 : vector<1x128xf32> to vector<2x128xf32>
    %98 = arith.addf %96, %97 : vector<2x128xf32>
    %99 = vector.extract_strided_slice %98 {offsets = [0, 0], sizes = [2, 32], strides = [1, 1]} : vector<2x128xf32> to vector<2x32xf32>
    %100 = arith.negf %99 : vector<2x32xf32>
    %101 = math.exp %100 : vector<2x32xf32>
    %cst_30 = arith.constant 1.000000e+00 : f32
    %102 = vector.broadcast %cst_30 : f32 to vector<2x32xf32>
    %103 = arith.addf %102, %101 : vector<2x32xf32>
    %104 = arith.divf %102, %103 : vector<2x32xf32>
    %105 = vector.extract_strided_slice %98 {offsets = [0, 32], sizes = [2, 32], strides = [1, 1]} : vector<2x128xf32> to vector<2x32xf32>
    %106 = arith.negf %105 : vector<2x32xf32>
    %107 = math.exp %106 : vector<2x32xf32>
    %cst_31 = arith.constant 1.000000e+00 : f32
    %108 = vector.broadcast %cst_31 : f32 to vector<2x32xf32>
    %109 = arith.addf %108, %107 : vector<2x32xf32>
    %110 = arith.divf %108, %109 : vector<2x32xf32>
    %111 = vector.extract_strided_slice %98 {offsets = [0, 64], sizes = [2, 32], strides = [1, 1]} : vector<2x128xf32> to vector<2x32xf32>
    %112 = math.tanh %111 : vector<2x32xf32>
    %113 = vector.extract_strided_slice %98 {offsets = [0, 96], sizes = [2, 32], strides = [1, 1]} : vector<2x128xf32> to vector<2x32xf32>
    %114 = arith.negf %113 : vector<2x32xf32>
    %115 = math.exp %114 : vector<2x32xf32>
    %cst_32 = arith.constant 1.000000e+00 : f32
    %116 = vector.broadcast %cst_32 : f32 to vector<2x32xf32>
    %117 = arith.addf %116, %115 : vector<2x32xf32>
    %118 = arith.divf %116, %117 : vector<2x32xf32>
    %119 = arith.mulf %110, %65 : vector<2x32xf32>
    %120 = arith.mulf %104, %112 : vector<2x32xf32>
    %121 = arith.addf %119, %120 : vector<2x32xf32>
    %122 = math.tanh %121 : vector<2x32xf32>
    %123 = arith.mulf %118, %122 : vector<2x32xf32>
    %124 = tpu.concatenate %123, %121 in 1 : vector<2x32xf32>, vector<2x32xf32> -> vector<2x64xf32>
    %cst_33 = arith.constant dense<0.000000e+00> : vector<2x8xf32>
    %125 = tpu.matmul %124, %3, %cst_33 {dimension_numbers = #tpu.dot_dimension_numbers<[1], [0], [0], [1], [0, 0, 1, 1], [], []>} : vector<2x64xf32>, vector<64x8xf32>, vector<2x8xf32> -> vector<2x8xf32>
    %126 = vector.broadcast %4 : vector<1x8xf32> to vector<2x8xf32>
    %127 = arith.addf %125, %126 : vector<2x8xf32>
    %128 = vector.shape_cast %127 : vector<2x8xf32> to vector<2x1x8xf32>
    %129 = vector.broadcast %128 : vector<2x1x8xf32> to vector<2x4x8xf32>
    %130 = vector.broadcast %2 : vector<2x4x1xf32> to vector<2x4x8xf32>
    %131 = arith.addf %129, %130 : vector<2x4x8xf32>
    %132 = math.tanh %131 : vector<2x4x8xf32>
    %133 = vector.broadcast %6 : vector<1x1x8xf32> to vector<2x4x8xf32>
    %134 = arith.mulf %132, %133 : vector<2x4x8xf32>
    %cst_34 = arith.constant dense<0.000000e+00> : vector<2x4xf32>
    %135 = vector.multi_reduction <add>, %134, %cst_34 [2] : vector<2x4x8xf32> to vector<2x4xf32>
    %136 = vector.broadcast %7 : vector<1x1xf32> to vector<2x4xf32>
    %137 = arith.addf %135, %136 : vector<2x4xf32>
    %cst_35 = arith.constant dense<0xFF800000> : vector<2xf32>
    %138 = vector.multi_reduction <maximumf>, %137, %cst_35 [1] : vector<2x4xf32> to vector<2xf32>
    %139 = vector.shape_cast %138 : vector<2xf32> to vector<2x1xf32>
    %140 = vector.broadcast %139 : vector<2x1xf32> to vector<2x4xf32>
    %141 = arith.subf %137, %140 : vector<2x4xf32>
    %142 = math.exp %141 : vector<2x4xf32>
    %cst_36 = arith.constant dense<0.000000e+00> : vector<2xf32>
    %143 = vector.multi_reduction <add>, %142, %cst_36 [1] : vector<2x4xf32> to vector<2xf32>
    %144 = vector.shape_cast %143 : vector<2xf32> to vector<2x1xf32>
    %145 = tpu.reciprocal %144 {approx = true} : vector<2x1xf32> -> vector<2x1xf32>
    %146 = vector.broadcast %145 : vector<2x1xf32> to vector<2x4xf32>
    %147 = arith.mulf %142, %146 : vector<2x4xf32>
    %148 = vector.extract_strided_slice %0 {offsets = [0, 2, 0], sizes = [2, 1, 4], strides = [1, 1, 1]} : vector<2x8x4xf32> to vector<2x1x4xf32>
    %149 = vector.shape_cast %148 : vector<2x1x4xf32> to vector<2x4xf32>
    %150 = arith.mulf %147, %149 : vector<2x4xf32>
    %151 = tpu.concatenate %150, %123 in 1 : vector<2x4xf32>, vector<2x32xf32> -> vector<2x36xf32>
    %cst_37 = arith.constant dense<0.000000e+00> : vector<2x128xf32>
    %152 = tpu.matmul %151, %8, %cst_37 {dimension_numbers = #tpu.dot_dimension_numbers<[1], [0], [0], [1], [0, 0, 1, 1], [], []>} : vector<2x36xf32>, vector<36x128xf32>, vector<2x128xf32> -> vector<2x128xf32>
    %153 = vector.broadcast %9 : vector<1x128xf32> to vector<2x128xf32>
    %154 = arith.addf %152, %153 : vector<2x128xf32>
    %155 = vector.extract_strided_slice %154 {offsets = [0, 0], sizes = [2, 32], strides = [1, 1]} : vector<2x128xf32> to vector<2x32xf32>
    %156 = arith.negf %155 : vector<2x32xf32>
    %157 = math.exp %156 : vector<2x32xf32>
    %cst_38 = arith.constant 1.000000e+00 : f32
    %158 = vector.broadcast %cst_38 : f32 to vector<2x32xf32>
    %159 = arith.addf %158, %157 : vector<2x32xf32>
    %160 = arith.divf %158, %159 : vector<2x32xf32>
    %161 = vector.extract_strided_slice %154 {offsets = [0, 32], sizes = [2, 32], strides = [1, 1]} : vector<2x128xf32> to vector<2x32xf32>
    %162 = arith.negf %161 : vector<2x32xf32>
    %163 = math.exp %162 : vector<2x32xf32>
    %cst_39 = arith.constant 1.000000e+00 : f32
    %164 = vector.broadcast %cst_39 : f32 to vector<2x32xf32>
    %165 = arith.addf %164, %163 : vector<2x32xf32>
    %166 = arith.divf %164, %165 : vector<2x32xf32>
    %167 = vector.extract_strided_slice %154 {offsets = [0, 64], sizes = [2, 32], strides = [1, 1]} : vector<2x128xf32> to vector<2x32xf32>
    %168 = math.tanh %167 : vector<2x32xf32>
    %169 = vector.extract_strided_slice %154 {offsets = [0, 96], sizes = [2, 32], strides = [1, 1]} : vector<2x128xf32> to vector<2x32xf32>
    %170 = arith.negf %169 : vector<2x32xf32>
    %171 = math.exp %170 : vector<2x32xf32>
    %cst_40 = arith.constant 1.000000e+00 : f32
    %172 = vector.broadcast %cst_40 : f32 to vector<2x32xf32>
    %173 = arith.addf %172, %171 : vector<2x32xf32>
    %174 = arith.divf %172, %173 : vector<2x32xf32>
    %175 = arith.mulf %166, %121 : vector<2x32xf32>
    %176 = arith.mulf %160, %168 : vector<2x32xf32>
    %177 = arith.addf %175, %176 : vector<2x32xf32>
    %178 = math.tanh %177 : vector<2x32xf32>
    %179 = arith.mulf %174, %178 : vector<2x32xf32>
    %180 = tpu.concatenate %179, %177 in 1 : vector<2x32xf32>, vector<2x32xf32> -> vector<2x64xf32>
    %cst_41 = arith.constant dense<0.000000e+00> : vector<2x8xf32>
    %181 = tpu.matmul %180, %3, %cst_41 {dimension_numbers = #tpu.dot_dimension_numbers<[1], [0], [0], [1], [0, 0, 1, 1], [], []>} : vector<2x64xf32>, vector<64x8xf32>, vector<2x8xf32> -> vector<2x8xf32>
    %182 = vector.broadcast %4 : vector<1x8xf32> to vector<2x8xf32>
    %183 = arith.addf %181, %182 : vector<2x8xf32>
    %184 = vector.shape_cast %183 : vector<2x8xf32> to vector<2x1x8xf32>
    %185 = vector.broadcast %184 : vector<2x1x8xf32> to vector<2x4x8xf32>
    %186 = vector.broadcast %2 : vector<2x4x1xf32> to vector<2x4x8xf32>
    %187 = arith.addf %185, %186 : vector<2x4x8xf32>
    %188 = math.tanh %187 : vector<2x4x8xf32>
    %189 = vector.broadcast %6 : vector<1x1x8xf32> to vector<2x4x8xf32>
    %190 = arith.mulf %188, %189 : vector<2x4x8xf32>
    %cst_42 = arith.constant dense<0.000000e+00> : vector<2x4xf32>
    %191 = vector.multi_reduction <add>, %190, %cst_42 [2] : vector<2x4x8xf32> to vector<2x4xf32>
    %192 = vector.broadcast %7 : vector<1x1xf32> to vector<2x4xf32>
    %193 = arith.addf %191, %192 : vector<2x4xf32>
    %cst_43 = arith.constant dense<0xFF800000> : vector<2xf32>
    %194 = vector.multi_reduction <maximumf>, %193, %cst_43 [1] : vector<2x4xf32> to vector<2xf32>
    %195 = vector.shape_cast %194 : vector<2xf32> to vector<2x1xf32>
    %196 = vector.broadcast %195 : vector<2x1xf32> to vector<2x4xf32>
    %197 = arith.subf %193, %196 : vector<2x4xf32>
    %198 = math.exp %197 : vector<2x4xf32>
    %cst_44 = arith.constant dense<0.000000e+00> : vector<2xf32>
    %199 = vector.multi_reduction <add>, %198, %cst_44 [1] : vector<2x4xf32> to vector<2xf32>
    %200 = vector.shape_cast %199 : vector<2xf32> to vector<2x1xf32>
    %201 = tpu.reciprocal %200 {approx = true} : vector<2x1xf32> -> vector<2x1xf32>
    %202 = vector.broadcast %201 : vector<2x1xf32> to vector<2x4xf32>
    %203 = arith.mulf %198, %202 : vector<2x4xf32>
    %204 = vector.extract_strided_slice %0 {offsets = [0, 3, 0], sizes = [2, 1, 4], strides = [1, 1, 1]} : vector<2x8x4xf32> to vector<2x1x4xf32>
    %205 = vector.shape_cast %204 : vector<2x1x4xf32> to vector<2x4xf32>
    %206 = arith.mulf %203, %205 : vector<2x4xf32>
    %207 = tpu.concatenate %206, %179 in 1 : vector<2x4xf32>, vector<2x32xf32> -> vector<2x36xf32>
    %cst_45 = arith.constant dense<0.000000e+00> : vector<2x128xf32>
    %208 = tpu.matmul %207, %8, %cst_45 {dimension_numbers = #tpu.dot_dimension_numbers<[1], [0], [0], [1], [0, 0, 1, 1], [], []>} : vector<2x36xf32>, vector<36x128xf32>, vector<2x128xf32> -> vector<2x128xf32>
    %209 = vector.broadcast %9 : vector<1x128xf32> to vector<2x128xf32>
    %210 = arith.addf %208, %209 : vector<2x128xf32>
    %211 = vector.extract_strided_slice %210 {offsets = [0, 0], sizes = [2, 32], strides = [1, 1]} : vector<2x128xf32> to vector<2x32xf32>
    %212 = arith.negf %211 : vector<2x32xf32>
    %213 = math.exp %212 : vector<2x32xf32>
    %cst_46 = arith.constant 1.000000e+00 : f32
    %214 = vector.broadcast %cst_46 : f32 to vector<2x32xf32>
    %215 = arith.addf %214, %213 : vector<2x32xf32>
    %216 = arith.divf %214, %215 : vector<2x32xf32>
    %217 = vector.extract_strided_slice %210 {offsets = [0, 32], sizes = [2, 32], strides = [1, 1]} : vector<2x128xf32> to vector<2x32xf32>
    %218 = arith.negf %217 : vector<2x32xf32>
    %219 = math.exp %218 : vector<2x32xf32>
    %cst_47 = arith.constant 1.000000e+00 : f32
    %220 = vector.broadcast %cst_47 : f32 to vector<2x32xf32>
    %221 = arith.addf %220, %219 : vector<2x32xf32>
    %222 = arith.divf %220, %221 : vector<2x32xf32>
    %223 = vector.extract_strided_slice %210 {offsets = [0, 64], sizes = [2, 32], strides = [1, 1]} : vector<2x128xf32> to vector<2x32xf32>
    %224 = math.tanh %223 : vector<2x32xf32>
    %225 = vector.extract_strided_slice %210 {offsets = [0, 96], sizes = [2, 32], strides = [1, 1]} : vector<2x128xf32> to vector<2x32xf32>
    %226 = arith.negf %225 : vector<2x32xf32>
    %227 = math.exp %226 : vector<2x32xf32>
    %cst_48 = arith.constant 1.000000e+00 : f32
    %228 = vector.broadcast %cst_48 : f32 to vector<2x32xf32>
    %229 = arith.addf %228, %227 : vector<2x32xf32>
    %230 = arith.divf %228, %229 : vector<2x32xf32>
    %231 = arith.mulf %222, %177 : vector<2x32xf32>
    %232 = arith.mulf %216, %224 : vector<2x32xf32>
    %233 = arith.addf %231, %232 : vector<2x32xf32>
    %234 = math.tanh %233 : vector<2x32xf32>
    %235 = arith.mulf %230, %234 : vector<2x32xf32>
    %236 = tpu.concatenate %235, %233 in 1 : vector<2x32xf32>, vector<2x32xf32> -> vector<2x64xf32>
    %cst_49 = arith.constant dense<0.000000e+00> : vector<2x8xf32>
    %237 = tpu.matmul %236, %3, %cst_49 {dimension_numbers = #tpu.dot_dimension_numbers<[1], [0], [0], [1], [0, 0, 1, 1], [], []>} : vector<2x64xf32>, vector<64x8xf32>, vector<2x8xf32> -> vector<2x8xf32>
    %238 = vector.broadcast %4 : vector<1x8xf32> to vector<2x8xf32>
    %239 = arith.addf %237, %238 : vector<2x8xf32>
    %240 = vector.shape_cast %239 : vector<2x8xf32> to vector<2x1x8xf32>
    %241 = vector.broadcast %240 : vector<2x1x8xf32> to vector<2x4x8xf32>
    %242 = vector.broadcast %2 : vector<2x4x1xf32> to vector<2x4x8xf32>
    %243 = arith.addf %241, %242 : vector<2x4x8xf32>
    %244 = math.tanh %243 : vector<2x4x8xf32>
    %245 = vector.broadcast %6 : vector<1x1x8xf32> to vector<2x4x8xf32>
    %246 = arith.mulf %244, %245 : vector<2x4x8xf32>
    %cst_50 = arith.constant dense<0.000000e+00> : vector<2x4xf32>
    %247 = vector.multi_reduction <add>, %246, %cst_50 [2] : vector<2x4x8xf32> to vector<2x4xf32>
    %248 = vector.broadcast %7 : vector<1x1xf32> to vector<2x4xf32>
    %249 = arith.addf %247, %248 : vector<2x4xf32>
    %cst_51 = arith.constant dense<0xFF800000> : vector<2xf32>
    %250 = vector.multi_reduction <maximumf>, %249, %cst_51 [1] : vector<2x4xf32> to vector<2xf32>
    %251 = vector.shape_cast %250 : vector<2xf32> to vector<2x1xf32>
    %252 = vector.broadcast %251 : vector<2x1xf32> to vector<2x4xf32>
    %253 = arith.subf %249, %252 : vector<2x4xf32>
    %254 = math.exp %253 : vector<2x4xf32>
    %cst_52 = arith.constant dense<0.000000e+00> : vector<2xf32>
    %255 = vector.multi_reduction <add>, %254, %cst_52 [1] : vector<2x4xf32> to vector<2xf32>
    %256 = vector.shape_cast %255 : vector<2xf32> to vector<2x1xf32>
    %257 = tpu.reciprocal %256 {approx = true} : vector<2x1xf32> -> vector<2x1xf32>
    %258 = vector.broadcast %257 : vector<2x1xf32> to vector<2x4xf32>
    %259 = arith.mulf %254, %258 : vector<2x4xf32>
    %260 = vector.extract_strided_slice %0 {offsets = [0, 4, 0], sizes = [2, 1, 4], strides = [1, 1, 1]} : vector<2x8x4xf32> to vector<2x1x4xf32>
    %261 = vector.shape_cast %260 : vector<2x1x4xf32> to vector<2x4xf32>
    %262 = arith.mulf %259, %261 : vector<2x4xf32>
    %263 = tpu.concatenate %262, %235 in 1 : vector<2x4xf32>, vector<2x32xf32> -> vector<2x36xf32>
    %cst_53 = arith.constant dense<0.000000e+00> : vector<2x128xf32>
    %264 = tpu.matmul %263, %8, %cst_53 {dimension_numbers = #tpu.dot_dimension_numbers<[1], [0], [0], [1], [0, 0, 1, 1], [], []>} : vector<2x36xf32>, vector<36x128xf32>, vector<2x128xf32> -> vector<2x128xf32>
    %265 = vector.broadcast %9 : vector<1x128xf32> to vector<2x128xf32>
    %266 = arith.addf %264, %265 : vector<2x128xf32>
    %267 = vector.extract_strided_slice %266 {offsets = [0, 0], sizes = [2, 32], strides = [1, 1]} : vector<2x128xf32> to vector<2x32xf32>
    %268 = arith.negf %267 : vector<2x32xf32>
    %269 = math.exp %268 : vector<2x32xf32>
    %cst_54 = arith.constant 1.000000e+00 : f32
    %270 = vector.broadcast %cst_54 : f32 to vector<2x32xf32>
    %271 = arith.addf %270, %269 : vector<2x32xf32>
    %272 = arith.divf %270, %271 : vector<2x32xf32>
    %273 = vector.extract_strided_slice %266 {offsets = [0, 32], sizes = [2, 32], strides = [1, 1]} : vector<2x128xf32> to vector<2x32xf32>
    %274 = arith.negf %273 : vector<2x32xf32>
    %275 = math.exp %274 : vector<2x32xf32>
    %cst_55 = arith.constant 1.000000e+00 : f32
    %276 = vector.broadcast %cst_55 : f32 to vector<2x32xf32>
    %277 = arith.addf %276, %275 : vector<2x32xf32>
    %278 = arith.divf %276, %277 : vector<2x32xf32>
    %279 = vector.extract_strided_slice %266 {offsets = [0, 64], sizes = [2, 32], strides = [1, 1]} : vector<2x128xf32> to vector<2x32xf32>
    %280 = math.tanh %279 : vector<2x32xf32>
    %281 = vector.extract_strided_slice %266 {offsets = [0, 96], sizes = [2, 32], strides = [1, 1]} : vector<2x128xf32> to vector<2x32xf32>
    %282 = arith.negf %281 : vector<2x32xf32>
    %283 = math.exp %282 : vector<2x32xf32>
    %cst_56 = arith.constant 1.000000e+00 : f32
    %284 = vector.broadcast %cst_56 : f32 to vector<2x32xf32>
    %285 = arith.addf %284, %283 : vector<2x32xf32>
    %286 = arith.divf %284, %285 : vector<2x32xf32>
    %287 = arith.mulf %278, %233 : vector<2x32xf32>
    %288 = arith.mulf %272, %280 : vector<2x32xf32>
    %289 = arith.addf %287, %288 : vector<2x32xf32>
    %290 = math.tanh %289 : vector<2x32xf32>
    %291 = arith.mulf %286, %290 : vector<2x32xf32>
    %292 = tpu.concatenate %291, %289 in 1 : vector<2x32xf32>, vector<2x32xf32> -> vector<2x64xf32>
    %cst_57 = arith.constant dense<0.000000e+00> : vector<2x8xf32>
    %293 = tpu.matmul %292, %3, %cst_57 {dimension_numbers = #tpu.dot_dimension_numbers<[1], [0], [0], [1], [0, 0, 1, 1], [], []>} : vector<2x64xf32>, vector<64x8xf32>, vector<2x8xf32> -> vector<2x8xf32>
    %294 = vector.broadcast %4 : vector<1x8xf32> to vector<2x8xf32>
    %295 = arith.addf %293, %294 : vector<2x8xf32>
    %296 = vector.shape_cast %295 : vector<2x8xf32> to vector<2x1x8xf32>
    %297 = vector.broadcast %296 : vector<2x1x8xf32> to vector<2x4x8xf32>
    %298 = vector.broadcast %2 : vector<2x4x1xf32> to vector<2x4x8xf32>
    %299 = arith.addf %297, %298 : vector<2x4x8xf32>
    %300 = math.tanh %299 : vector<2x4x8xf32>
    %301 = vector.broadcast %6 : vector<1x1x8xf32> to vector<2x4x8xf32>
    %302 = arith.mulf %300, %301 : vector<2x4x8xf32>
    %cst_58 = arith.constant dense<0.000000e+00> : vector<2x4xf32>
    %303 = vector.multi_reduction <add>, %302, %cst_58 [2] : vector<2x4x8xf32> to vector<2x4xf32>
    %304 = vector.broadcast %7 : vector<1x1xf32> to vector<2x4xf32>
    %305 = arith.addf %303, %304 : vector<2x4xf32>
    %cst_59 = arith.constant dense<0xFF800000> : vector<2xf32>
    %306 = vector.multi_reduction <maximumf>, %305, %cst_59 [1] : vector<2x4xf32> to vector<2xf32>
    %307 = vector.shape_cast %306 : vector<2xf32> to vector<2x1xf32>
    %308 = vector.broadcast %307 : vector<2x1xf32> to vector<2x4xf32>
    %309 = arith.subf %305, %308 : vector<2x4xf32>
    %310 = math.exp %309 : vector<2x4xf32>
    %cst_60 = arith.constant dense<0.000000e+00> : vector<2xf32>
    %311 = vector.multi_reduction <add>, %310, %cst_60 [1] : vector<2x4xf32> to vector<2xf32>
    %312 = vector.shape_cast %311 : vector<2xf32> to vector<2x1xf32>
    %313 = tpu.reciprocal %312 {approx = true} : vector<2x1xf32> -> vector<2x1xf32>
    %314 = vector.broadcast %313 : vector<2x1xf32> to vector<2x4xf32>
    %315 = arith.mulf %310, %314 : vector<2x4xf32>
    %316 = vector.extract_strided_slice %0 {offsets = [0, 5, 0], sizes = [2, 1, 4], strides = [1, 1, 1]} : vector<2x8x4xf32> to vector<2x1x4xf32>
    %317 = vector.shape_cast %316 : vector<2x1x4xf32> to vector<2x4xf32>
    %318 = arith.mulf %315, %317 : vector<2x4xf32>
    %319 = tpu.concatenate %318, %291 in 1 : vector<2x4xf32>, vector<2x32xf32> -> vector<2x36xf32>
    %cst_61 = arith.constant dense<0.000000e+00> : vector<2x128xf32>
    %320 = tpu.matmul %319, %8, %cst_61 {dimension_numbers = #tpu.dot_dimension_numbers<[1], [0], [0], [1], [0, 0, 1, 1], [], []>} : vector<2x36xf32>, vector<36x128xf32>, vector<2x128xf32> -> vector<2x128xf32>
    %321 = vector.broadcast %9 : vector<1x128xf32> to vector<2x128xf32>
    %322 = arith.addf %320, %321 : vector<2x128xf32>
    %323 = vector.extract_strided_slice %322 {offsets = [0, 0], sizes = [2, 32], strides = [1, 1]} : vector<2x128xf32> to vector<2x32xf32>
    %324 = arith.negf %323 : vector<2x32xf32>
    %325 = math.exp %324 : vector<2x32xf32>
    %cst_62 = arith.constant 1.000000e+00 : f32
    %326 = vector.broadcast %cst_62 : f32 to vector<2x32xf32>
    %327 = arith.addf %326, %325 : vector<2x32xf32>
    %328 = arith.divf %326, %327 : vector<2x32xf32>
    %329 = vector.extract_strided_slice %322 {offsets = [0, 32], sizes = [2, 32], strides = [1, 1]} : vector<2x128xf32> to vector<2x32xf32>
    %330 = arith.negf %329 : vector<2x32xf32>
    %331 = math.exp %330 : vector<2x32xf32>
    %cst_63 = arith.constant 1.000000e+00 : f32
    %332 = vector.broadcast %cst_63 : f32 to vector<2x32xf32>
    %333 = arith.addf %332, %331 : vector<2x32xf32>
    %334 = arith.divf %332, %333 : vector<2x32xf32>
    %335 = vector.extract_strided_slice %322 {offsets = [0, 64], sizes = [2, 32], strides = [1, 1]} : vector<2x128xf32> to vector<2x32xf32>
    %336 = math.tanh %335 : vector<2x32xf32>
    %337 = vector.extract_strided_slice %322 {offsets = [0, 96], sizes = [2, 32], strides = [1, 1]} : vector<2x128xf32> to vector<2x32xf32>
    %338 = arith.negf %337 : vector<2x32xf32>
    %339 = math.exp %338 : vector<2x32xf32>
    %cst_64 = arith.constant 1.000000e+00 : f32
    %340 = vector.broadcast %cst_64 : f32 to vector<2x32xf32>
    %341 = arith.addf %340, %339 : vector<2x32xf32>
    %342 = arith.divf %340, %341 : vector<2x32xf32>
    %343 = arith.mulf %334, %289 : vector<2x32xf32>
    %344 = arith.mulf %328, %336 : vector<2x32xf32>
    %345 = arith.addf %343, %344 : vector<2x32xf32>
    %346 = math.tanh %345 : vector<2x32xf32>
    %347 = arith.mulf %342, %346 : vector<2x32xf32>
    %348 = tpu.concatenate %347, %345 in 1 : vector<2x32xf32>, vector<2x32xf32> -> vector<2x64xf32>
    %cst_65 = arith.constant dense<0.000000e+00> : vector<2x8xf32>
    %349 = tpu.matmul %348, %3, %cst_65 {dimension_numbers = #tpu.dot_dimension_numbers<[1], [0], [0], [1], [0, 0, 1, 1], [], []>} : vector<2x64xf32>, vector<64x8xf32>, vector<2x8xf32> -> vector<2x8xf32>
    %350 = vector.broadcast %4 : vector<1x8xf32> to vector<2x8xf32>
    %351 = arith.addf %349, %350 : vector<2x8xf32>
    %352 = vector.shape_cast %351 : vector<2x8xf32> to vector<2x1x8xf32>
    %353 = vector.broadcast %352 : vector<2x1x8xf32> to vector<2x4x8xf32>
    %354 = vector.broadcast %2 : vector<2x4x1xf32> to vector<2x4x8xf32>
    %355 = arith.addf %353, %354 : vector<2x4x8xf32>
    %356 = math.tanh %355 : vector<2x4x8xf32>
    %357 = vector.broadcast %6 : vector<1x1x8xf32> to vector<2x4x8xf32>
    %358 = arith.mulf %356, %357 : vector<2x4x8xf32>
    %cst_66 = arith.constant dense<0.000000e+00> : vector<2x4xf32>
    %359 = vector.multi_reduction <add>, %358, %cst_66 [2] : vector<2x4x8xf32> to vector<2x4xf32>
    %360 = vector.broadcast %7 : vector<1x1xf32> to vector<2x4xf32>
    %361 = arith.addf %359, %360 : vector<2x4xf32>
    %cst_67 = arith.constant dense<0xFF800000> : vector<2xf32>
    %362 = vector.multi_reduction <maximumf>, %361, %cst_67 [1] : vector<2x4xf32> to vector<2xf32>
    %363 = vector.shape_cast %362 : vector<2xf32> to vector<2x1xf32>
    %364 = vector.broadcast %363 : vector<2x1xf32> to vector<2x4xf32>
    %365 = arith.subf %361, %364 : vector<2x4xf32>
    %366 = math.exp %365 : vector<2x4xf32>
    %cst_68 = arith.constant dense<0.000000e+00> : vector<2xf32>
    %367 = vector.multi_reduction <add>, %366, %cst_68 [1] : vector<2x4xf32> to vector<2xf32>
    %368 = vector.shape_cast %367 : vector<2xf32> to vector<2x1xf32>
    %369 = tpu.reciprocal %368 {approx = true} : vector<2x1xf32> -> vector<2x1xf32>
    %370 = vector.broadcast %369 : vector<2x1xf32> to vector<2x4xf32>
    %371 = arith.mulf %366, %370 : vector<2x4xf32>
    %372 = vector.extract_strided_slice %0 {offsets = [0, 6, 0], sizes = [2, 1, 4], strides = [1, 1, 1]} : vector<2x8x4xf32> to vector<2x1x4xf32>
    %373 = vector.shape_cast %372 : vector<2x1x4xf32> to vector<2x4xf32>
    %374 = arith.mulf %371, %373 : vector<2x4xf32>
    %375 = tpu.concatenate %374, %347 in 1 : vector<2x4xf32>, vector<2x32xf32> -> vector<2x36xf32>
    %cst_69 = arith.constant dense<0.000000e+00> : vector<2x128xf32>
    %376 = tpu.matmul %375, %8, %cst_69 {dimension_numbers = #tpu.dot_dimension_numbers<[1], [0], [0], [1], [0, 0, 1, 1], [], []>} : vector<2x36xf32>, vector<36x128xf32>, vector<2x128xf32> -> vector<2x128xf32>
    %377 = vector.broadcast %9 : vector<1x128xf32> to vector<2x128xf32>
    %378 = arith.addf %376, %377 : vector<2x128xf32>
    %379 = vector.extract_strided_slice %378 {offsets = [0, 0], sizes = [2, 32], strides = [1, 1]} : vector<2x128xf32> to vector<2x32xf32>
    %380 = arith.negf %379 : vector<2x32xf32>
    %381 = math.exp %380 : vector<2x32xf32>
    %cst_70 = arith.constant 1.000000e+00 : f32
    %382 = vector.broadcast %cst_70 : f32 to vector<2x32xf32>
    %383 = arith.addf %382, %381 : vector<2x32xf32>
    %384 = arith.divf %382, %383 : vector<2x32xf32>
    %385 = vector.extract_strided_slice %378 {offsets = [0, 32], sizes = [2, 32], strides = [1, 1]} : vector<2x128xf32> to vector<2x32xf32>
    %386 = arith.negf %385 : vector<2x32xf32>
    %387 = math.exp %386 : vector<2x32xf32>
    %cst_71 = arith.constant 1.000000e+00 : f32
    %388 = vector.broadcast %cst_71 : f32 to vector<2x32xf32>
    %389 = arith.addf %388, %387 : vector<2x32xf32>
    %390 = arith.divf %388, %389 : vector<2x32xf32>
    %391 = vector.extract_strided_slice %378 {offsets = [0, 64], sizes = [2, 32], strides = [1, 1]} : vector<2x128xf32> to vector<2x32xf32>
    %392 = math.tanh %391 : vector<2x32xf32>
    %393 = vector.extract_strided_slice %378 {offsets = [0, 96], sizes = [2, 32], strides = [1, 1]} : vector<2x128xf32> to vector<2x32xf32>
    %394 = arith.negf %393 : vector<2x32xf32>
    %395 = math.exp %394 : vector<2x32xf32>
    %cst_72 = arith.constant 1.000000e+00 : f32
    %396 = vector.broadcast %cst_72 : f32 to vector<2x32xf32>
    %397 = arith.addf %396, %395 : vector<2x32xf32>
    %398 = arith.divf %396, %397 : vector<2x32xf32>
    %399 = arith.mulf %390, %345 : vector<2x32xf32>
    %400 = arith.mulf %384, %392 : vector<2x32xf32>
    %401 = arith.addf %399, %400 : vector<2x32xf32>
    %402 = math.tanh %401 : vector<2x32xf32>
    %403 = arith.mulf %398, %402 : vector<2x32xf32>
    %404 = tpu.concatenate %403, %401 in 1 : vector<2x32xf32>, vector<2x32xf32> -> vector<2x64xf32>
    %cst_73 = arith.constant dense<0.000000e+00> : vector<2x8xf32>
    %405 = tpu.matmul %404, %3, %cst_73 {dimension_numbers = #tpu.dot_dimension_numbers<[1], [0], [0], [1], [0, 0, 1, 1], [], []>} : vector<2x64xf32>, vector<64x8xf32>, vector<2x8xf32> -> vector<2x8xf32>
    %406 = vector.broadcast %4 : vector<1x8xf32> to vector<2x8xf32>
    %407 = arith.addf %405, %406 : vector<2x8xf32>
    %408 = vector.shape_cast %407 : vector<2x8xf32> to vector<2x1x8xf32>
    %409 = vector.broadcast %408 : vector<2x1x8xf32> to vector<2x4x8xf32>
    %410 = vector.broadcast %2 : vector<2x4x1xf32> to vector<2x4x8xf32>
    %411 = arith.addf %409, %410 : vector<2x4x8xf32>
    %412 = math.tanh %411 : vector<2x4x8xf32>
    %413 = vector.broadcast %6 : vector<1x1x8xf32> to vector<2x4x8xf32>
    %414 = arith.mulf %412, %413 : vector<2x4x8xf32>
    %cst_74 = arith.constant dense<0.000000e+00> : vector<2x4xf32>
    %415 = vector.multi_reduction <add>, %414, %cst_74 [2] : vector<2x4x8xf32> to vector<2x4xf32>
    %416 = vector.broadcast %7 : vector<1x1xf32> to vector<2x4xf32>
    %417 = arith.addf %415, %416 : vector<2x4xf32>
    %cst_75 = arith.constant dense<0xFF800000> : vector<2xf32>
    %418 = vector.multi_reduction <maximumf>, %417, %cst_75 [1] : vector<2x4xf32> to vector<2xf32>
    %419 = vector.shape_cast %418 : vector<2xf32> to vector<2x1xf32>
    %420 = vector.broadcast %419 : vector<2x1xf32> to vector<2x4xf32>
    %421 = arith.subf %417, %420 : vector<2x4xf32>
    %422 = math.exp %421 : vector<2x4xf32>
    %cst_76 = arith.constant dense<0.000000e+00> : vector<2xf32>
    %423 = vector.multi_reduction <add>, %422, %cst_76 [1] : vector<2x4xf32> to vector<2xf32>
    %424 = vector.shape_cast %423 : vector<2xf32> to vector<2x1xf32>
    %425 = tpu.reciprocal %424 {approx = true} : vector<2x1xf32> -> vector<2x1xf32>
    %426 = vector.broadcast %425 : vector<2x1xf32> to vector<2x4xf32>
    %427 = arith.mulf %422, %426 : vector<2x4xf32>
    %428 = vector.extract_strided_slice %0 {offsets = [0, 7, 0], sizes = [2, 1, 4], strides = [1, 1, 1]} : vector<2x8x4xf32> to vector<2x1x4xf32>
    %429 = vector.shape_cast %428 : vector<2x1x4xf32> to vector<2x4xf32>
    %430 = arith.mulf %427, %429 : vector<2x4xf32>
    %431 = tpu.concatenate %430, %403 in 1 : vector<2x4xf32>, vector<2x32xf32> -> vector<2x36xf32>
    %cst_77 = arith.constant dense<0.000000e+00> : vector<2x128xf32>
    %432 = tpu.matmul %431, %8, %cst_77 {dimension_numbers = #tpu.dot_dimension_numbers<[1], [0], [0], [1], [0, 0, 1, 1], [], []>} : vector<2x36xf32>, vector<36x128xf32>, vector<2x128xf32> -> vector<2x128xf32>
    %433 = vector.broadcast %9 : vector<1x128xf32> to vector<2x128xf32>
    %434 = arith.addf %432, %433 : vector<2x128xf32>
    %435 = vector.extract_strided_slice %434 {offsets = [0, 0], sizes = [2, 32], strides = [1, 1]} : vector<2x128xf32> to vector<2x32xf32>
    %436 = arith.negf %435 : vector<2x32xf32>
    %437 = math.exp %436 : vector<2x32xf32>
    %cst_78 = arith.constant 1.000000e+00 : f32
    %438 = vector.broadcast %cst_78 : f32 to vector<2x32xf32>
    %439 = arith.addf %438, %437 : vector<2x32xf32>
    %440 = arith.divf %438, %439 : vector<2x32xf32>
    %441 = vector.extract_strided_slice %434 {offsets = [0, 32], sizes = [2, 32], strides = [1, 1]} : vector<2x128xf32> to vector<2x32xf32>
    %442 = arith.negf %441 : vector<2x32xf32>
    %443 = math.exp %442 : vector<2x32xf32>
    %cst_79 = arith.constant 1.000000e+00 : f32
    %444 = vector.broadcast %cst_79 : f32 to vector<2x32xf32>
    %445 = arith.addf %444, %443 : vector<2x32xf32>
    %446 = arith.divf %444, %445 : vector<2x32xf32>
    %447 = vector.extract_strided_slice %434 {offsets = [0, 64], sizes = [2, 32], strides = [1, 1]} : vector<2x128xf32> to vector<2x32xf32>
    %448 = math.tanh %447 : vector<2x32xf32>
    %449 = vector.extract_strided_slice %434 {offsets = [0, 96], sizes = [2, 32], strides = [1, 1]} : vector<2x128xf32> to vector<2x32xf32>
    %450 = arith.negf %449 : vector<2x32xf32>
    %451 = math.exp %450 : vector<2x32xf32>
    %cst_80 = arith.constant 1.000000e+00 : f32
    %452 = vector.broadcast %cst_80 : f32 to vector<2x32xf32>
    %453 = arith.addf %452, %451 : vector<2x32xf32>
    %454 = arith.divf %452, %453 : vector<2x32xf32>
    %455 = arith.mulf %446, %401 : vector<2x32xf32>
    %456 = arith.mulf %440, %448 : vector<2x32xf32>
    %457 = arith.addf %455, %456 : vector<2x32xf32>
    %458 = math.tanh %457 : vector<2x32xf32>
    %459 = arith.mulf %454, %458 : vector<2x32xf32>
    %460 = tpu.concatenate %38, %94, %150, %206, %262, %318, %374, %430 in 1 : vector<2x4xf32>, vector<2x4xf32>, vector<2x4xf32>, vector<2x4xf32>, vector<2x4xf32>, vector<2x4xf32>, vector<2x4xf32>, vector<2x4xf32> -> vector<2x32xf32>
    %c0_81 = arith.constant 0 : index
    %c0_82 = arith.constant 0 : index
    %461 = vector.load %arg9[%c0_81, %c0_82] : memref<2x32xf32, #tpu.memory_space<vmem>>, vector<2x32xf32>
    tpu.vector_store %arg9[%c0_81, %c0_82], %460 {strides = array<i32>} : memref<2x32xf32, #tpu.memory_space<vmem>>, vector<2x32xf32>,
    %462 = tpu.concatenate %67, %123, %179, %235, %291, %347, %403, %459 in 1 : vector<2x32xf32>, vector<2x32xf32>, vector<2x32xf32>, vector<2x32xf32>, vector<2x32xf32>, vector<2x32xf32>, vector<2x32xf32>, vector<2x32xf32> -> vector<2x256xf32>
    %c0_83 = arith.constant 0 : index
    %c0_84 = arith.constant 0 : index
    %463 = vector.load %arg10[%c0_83, %c0_84] : memref<2x256xf32, #tpu.memory_space<vmem>>, vector<2x256xf32>
    tpu.vector_store %arg10[%c0_83, %c0_84], %462 {strides = array<i32>} : memref<2x256xf32, #tpu.memory_space<vmem>>, vector<2x256xf32>,
    return
  }
  func.func @transform_0(%arg0: i32) -> (i32, i32, i32) {
    %c0_i32 = arith.constant 0 : i32
    %c0_i32_0 = arith.constant 0 : i32
    %c0_i32_1 = arith.constant 0 : i32
    %c0_i32_2 = arith.constant 0 : i32
    return %c0_i32, %c0_i32_0, %c0_i32_1 : i32, i32, i32
  }
  func.func @transform_1(%arg0: i32) -> (i32, i32) {
    %c0_i32 = arith.constant 0 : i32
    %c0_i32_0 = arith.constant 0 : i32
    %c0_i32_1 = arith.constant 0 : i32
    return %c0_i32, %c0_i32_0 : i32, i32
  }
  func.func @transform_2(%arg0: i32) -> (i32, i32) {
    %c0_i32 = arith.constant 0 : i32
    %c0_i32_0 = arith.constant 0 : i32
    %c0_i32_1 = arith.constant 0 : i32
    return %c0_i32, %c0_i32_0 : i32, i32
  }
  func.func @transform_3(%arg0: i32) -> (i32, i32) {
    %c0_i32 = arith.constant 0 : i32
    %c0_i32_0 = arith.constant 0 : i32
    %c0_i32_1 = arith.constant 0 : i32
    return %c0_i32, %c0_i32_0 : i32, i32
  }
  func.func @transform_4(%arg0: i32) -> (i32, i32) {
    %c0_i32 = arith.constant 0 : i32
    %c0_i32_0 = arith.constant 0 : i32
    %c0_i32_1 = arith.constant 0 : i32
    return %c0_i32, %c0_i32_0 : i32, i32
  }
  func.func @transform_5(%arg0: i32) -> (i32, i32) {
    %c0_i32 = arith.constant 0 : i32
    %c0_i32_0 = arith.constant 0 : i32
    %c0_i32_1 = arith.constant 0 : i32
    return %c0_i32, %c0_i32_0 : i32, i32
  }
  func.func @transform_6(%arg0: i32) -> (i32, i32) {
    %c0_i32 = arith.constant 0 : i32
    %c0_i32_0 = arith.constant 0 : i32
    %c0_i32_1 = arith.constant 0 : i32
    return %c0_i32, %c0_i32_0 : i32, i32
  }
  func.func @transform_7(%arg0: i32) -> (i32, i32) {
    %c0_i32 = arith.constant 0 : i32
    %c0_i32_0 = arith.constant 0 : i32
    %c0_i32_1 = arith.constant 0 : i32
    return %c0_i32, %c0_i32_0 : i32, i32
  }
  func.func @transform_8(%arg0: i32) -> (i32, i32) {
    %c0_i32 = arith.constant 0 : i32
    %c0_i32_0 = arith.constant 0 : i32
    %c0_i32_1 = arith.constant 0 : i32
    return %c0_i32, %c0_i32_0 : i32, i32
  }
  func.func @transform_9(%arg0: i32) -> (i32, i32) {
    %c0_i32 = arith.constant 0 : i32
    %c0_i32_0 = arith.constant 0 : i32
    %c0_i32_1 = arith.constant 0 : i32
    return %c0_i32, %c0_i32_0 : i32, i32
  }
}

</mosaic_0001>

<bundles_post_ra>
// kernel: tpu_custom_call.1
= control target key start
LH: loop header
LB: loop body
LE: loop exit
PB: predicated region body
PF: predicated region fallthrough
CT: control target
= control target key end

     0   :  { %s4497_s0 = inlined_call_operand.vmem [shape: f32[2,8,4], index: 0, kind: input, shape index: {}]   ;;  %s4498_s1 = inlined_call_operand.vmem [shape: f32[2,4], index: 1, kind: input, shape index: {}]   ;;  %s4499_s2 = inlined_call_operand.vmem [shape: f32[64,8], index: 2, kind: input, shape index: {}]   ;;  %s4500_s3 = inlined_call_operand.vmem [shape: f32[1,8], index: 3, kind: input, shape index: {}]   ;;  %s4501_s4 = inlined_call_operand.vmem [shape: f32[1,8], index: 4, kind: input, shape index: {}]   ;;  %s4502_s5 = inlined_call_operand.<no memory space> [shape: f32[1,1], index: 5, kind: input, shape index: {}]   ;;  %s4503_s6 = inlined_call_operand.vmem [shape: f32[36,128], index: 6, kind: input, shape index: {}]   ;;  %s4504_s7 = inlined_call_operand.vmem [shape: f32[1,128], index: 7, kind: input, shape index: {}]   ;;  %s4505_s8 = inlined_call_operand.hbm [shape: f32[2,32], index: 8, kind: output, shape index: {0}]   ;;  %s4506_s9 = inlined_call_operand.hbm [shape: f32[2,256], index: 9, kind: output, shape index: {1}]  }
   0x1   :  { %v15_v0 = vstv %s4502_s5 }
   0x2   :  { %16 = vst [vmem:[#allocation2] sm:$0x1] %v15_v0 }
   0x3   :  { %17 = vsyncpa [#allocation4], 0  ;;  %v52_v1 = vld [vmem:[%s4499_s2] sm:$0xff]  ;;  %v53_v2 = vld [vmem:[%s4499_s2 + $0x8] sm:$0xff]  ;;  %v38_v4 = vlaneseq  ;;  %v3653_v5 = vmov 0.0|0.0   ;;  %vm3654_vm0 = vmmov 0  }
   0x4   :  { %v54_v3 = vld [vmem:[%s4499_s2 + $0x10] sm:$0xff]  ;;  %3298 = vmatprep.subr.bf16.mxu0 %v3653_v5  ;;  %v3727_v6 = vpack.c.bf16 %v53_v2, %v52_v1  ;;  %v55_v7 = vld [vmem:[%s4499_s2 + $0x18] sm:$0xff]  ;;  %v3655_v8 = vmov 0.0   ;;  %3310 = vmatprep.subr.bf16.mxu1 %v3653_v5  ;;  %v37_v11 = vld [vmem:[%s4498_s1] sm:$0x3] }
   0x5   :  { %3058 = vmatprep.mubr.msk.f32.mxu0 %vm3654_vm0, %v3655_v8  ;;  %v3735_v9 = vshrl.u32 %v38_v4, 7  ;;  %3071 = vmatprep.mubr.msk.f32.mxu1 %vm3654_vm0, %v3655_v8  ;;  %v3741_v10 = vpack.c.bf16 %v55_v7, %v54_v3 }
   0x6   :  { %3300 = vmatpush3.bf16.msra.mxu0 %v3727_v6 }
   0x7   :  { %18 = vsyncpa [#allocation6], 0  ;;  %3301 = vmatprep.subr.bf16.mxu0 %v3653_v5  ;;  %v56_v12 = vld [vmem:[%s4499_s2 + $0x20] sm:$0xff]  ;;  %v57_v13 = vld [vmem:[%s4499_s2 + $0x28] sm:$0xff]  ;;  %v3754_v14 = vsub.s32 0, %v3735_v9  ;;  %v3757_v15 = vsub.s32 1, %v3735_v9 }
   0x8   :  { %v3761_v17 = vpack.c.bf16 %v57_v13, %v56_v12  ;;  %v58_v18 = vld [vmem:[%s4499_s2 + $0x30] sm:$0xff]  ;;  %v59_v19 = vld [vmem:[%s4499_s2 + $0x38] sm:$0xff]  ;;  %v3656_v23 = vmov 0   ;;  %v3657_v24 = vmov 1966171168   ;;  %vm194_vm1 = vcmask 60416  }
   0x9   :  { %v41_v16 = vrot.slane %v37_v11, %v3754_v14  ;;  %v48_v20 = vrot.slane %v37_v11, %v3757_v15  ;;  %v3772_v21 = vpack.c.bf16 %v59_v19, %v58_v18  ;;  %v2888_v22 = vld [vmem:[#allocation2] ss:$0 sm:$0xff]  ;;  %3453 = vset.pattern.permute.xlu0 %v3656_v23  ;;  %3454 = vset.pattern.permute.xlu1 %v3656_v23  ;;  %v151_v25 = vunpack.c.l.s4 %v3657_v24  ;;  %v3834_v11 = vld [vmem:[%s4497_s0 + $0x8] sm:$0xff]  ;;  %s3658_s1 = smov 64   ;;  %s3659_s24 = smov 32  }
   0xa   :  { %3303 = vmatpush3.bf16.msra.mxu0 %v3741_v10  ;;  %v3783_v27 = vld [vmem:[%s4500_s3] ss:$0 sm:$0xff]  ;;  %v3810_v49 = vand.u32 127, %v38_v4  ;;  %vm224_vm2 = vcmask 1041409   ;;  %vm227_vm3 = vcmask 25600   ;;  %v295_v13 = vrot.slane %v3834_v11, %v3754_v14  ;;  %s3660_s25 = smov 36  }
   0xb   :  { %3304 = vmatprep.subr.bf16.mxu0 %v3653_v5  ;;  %43 = vbcast.lane.b32.xlu0 %v41_v16, 256  ;;  %v152_v26 = vunpack.c.0.s8 %v151_v25  ;;  %v3803_v42 = vld [vmem:[%s4501_s4] ss:$0 sm:$0xff]  ;;  %v64_v25 = vld [vmem:[%s4503_s6 + $0x8] sm:$0xff]  ;;  %vm333_vm4 = vcmask 1043456   ;;  %vm321_vm5 = vcmask 31744  }
   0xc   :  { %v3816_v52 = vsub.s32 %v3810_v49, %v3735_v9  ;;  %v3829_v7 = vld [vmem:[%s4497_s0] sm:$0xff]  ;;  %vm329_vm6 = vcmask 293888   ;;  %vm435_vm7 = vcmask 261120   ;;  %vm75_vm8 = vcmask 523264   ;;  %s3662_s12 = smov [#allocation3]  }
   0xd   :  { %v3786_v28 = vsub.s32 %v152_v26, %v3735_v9  ;;  %v288_v12 = vrot.slane %v3829_v7, %v3754_v14  ;;  %v63_v24 = vld [vmem:[%s4503_s6] sm:$0xff]  ;;  %vm2813_vm9 = vcmask 64512   ;;  %vm2815_vm10 = vcmask 97280   ;;  %s2864_s13 = sshll.u32 %s3662_s12, 4  ;;  %s2865_s13 = int_to_ptr.vmem [resolvable:$true] %s2864_s13 }
   0xe   :  { %3306 = vmatpush3.bf16.msra.mxu0 %v3761_v17  ;;  %v3850_v26 = vpack.c.bf16 %v64_v25, %v63_v24  ;;  %vm2817_vm11 = vcmask 130048   ;;  %vm2819_vm12 = vcmask 162816   ;;  %vm2821_vm13 = vcmask 195584   ;;  %s3605_s14 = scalar_lea.vmem %s2865_s13, 32  ;;  %p3610_p1 = scmp.lt.s32.totalorder %s2865_s13, %s2865_s13 }
   0xf   :  { %3307 = vmatprep.subr.bf16.mxu0 %v3653_v5  ;;  %50 = vbcast.lane.b32.xlu0 %v48_v20, 256  ;;  %vm2823_vm14 = vcmask 228352   ;;  %vm2825_vm15 = vcmask 254976   ;;  %p3606_p0 = scmp.ne.s32.totalorder %s2865_s13, %s3605_s14  ;;  %p3611_p2 = scmp.lt.s32.totalorder %s3605_s14, %s3605_s14 }
  0x10   :  { %3312 = vmatpush3.bf16.msra.mxu1 %v3850_v26 }
  0x11   :  { %3313 = vmatprep.subr.bf16.mxu1 %v3653_v5  ;;  %p3612_p3 = por %p3611_p2, %p3610_p1 }
  0x12   :  { %3309 = vmatpush3.bf16.msra.mxu0 %v3772_v21 }
  0x13   :  { %3328 = vmatprep.subr.bf16.mxu0 %v3653_v5  ;;  %207 = vperm.xlu0 %3453, %v2888_v22   ;;  %p3613_p4 = pnand %p3612_p3, %p3606_p0 }
  0x15   :  { %3059 = vmatmul.mubr.f32.vlgmr.msra.gmra.mrb[0].mxu0 %v3655_v8 }
  0x16   :  { %3103 = vmatprep.mubr.msk.f32.mxu0 %vm3654_vm0, %v3655_v8  ;;  %3330 = vmatpush3.bf16.msra.mxu0 %v3850_v26 }
  0x17   :  { %3331 = vmatprep.subr.bf16.mxu0 %v3653_v5 }
  0x7d   :  { %v3789_v32 = vpop.permute.xlu0 %43 }
  0x81   :  { %v3795_v38 = vpop.permute.xlu0 %50 }
  0x92   :  { %v3812_v51 = vpop.permute.xlu0 %207 }
  0xe8   :  { %v145_v29 = vpop.f32.mrb[0].mxu0 }
  0xe9   :  { %v146_v30 = vadd.f32 %v3783_v27, %v145_v29  ;;  %v3060_v31 = vpop.f32.mrb[1].mxu0 }
  0xeb   :  { %v156_v33 = vrot.slane %v146_v30, %v3786_v28 }
  0xed   :  { %v157_v34 = vcombine.high %v156_v33, %v156_v33  ;;  %v164_v35 = vrot.slane %v156_v33, %v3786_v28 }
  0xef   :  { %v171_v36 = vrot.slane %v157_v34, %v3786_v28  ;;  %v175_v37 = vrot.slane %v164_v35, %v3754_v14 }
  0xf1   :  { %v179_v39 = vrot.slane %v171_v36, %v3754_v14  ;;  %v182_v40 = vadd.f32 %v175_v37, %v3789_v32 }
  0xf3   :  { %3455 = vtanh.f32 %v182_v40  ;;  %v183_v41 = vadd.f32 %v179_v39, %v3795_v38  ;;  %v65_v40 = vld [vmem:[%s4503_s6 + $0x10] sm:$0xff] }
  0xf5   :  { %3457 = vtanh.f32 %v183_v41  ;;  %v66_v41 = vld [vmem:[%s4503_s6 + $0x18] sm:$0xff] }
  0xfd   :  { %v3456_v43 = vpop.eup %3455 }
  0xfe   :  { %v192_v44 = vmul.f32 %v3456_v43, %v3803_v42  ;;  %v3864_v43 = vpack.c.bf16 %v66_v41, %v65_v40 }
  0xff   :  { %v3458_v45 = vpop.eup %3457 }
 0x100   :  { %v195_v46 = vsel %vm194_vm1, %v192_v44, 0.0  ;;  %v193_v47 = vmul.f32 %v3458_v45, %v3803_v42  ;;  %3315 = vmatpush3.bf16.msra.mxu1 %v3864_v43  ;;  %3333 = vmatpush3.bf16.msra.mxu0 %v3864_v43  ;;  %v3872_v45 = vld [vmem:[%s4503_s6 + $0x20] sm:$0xf] }
 0x101   :  { %196 = vadd.xlane.f32.xlu1 %v195_v46  ;;  %3069 = vmatprep.subr.mxu1 %v3655_v8 }
 0x102   :  { %v198_v48 = vsel %vm194_vm1, %v193_v47, 0.0  ;;  %3101 = vmatprep.subr.mxu0 %v3655_v8 }
 0x104   :  { %3070 = vmatpush3.msk.msra.mxu1 %vm333_vm4, %v3872_v45  ;;  %3102 = vmatpush3.msk.msra.mxu0 %vm333_vm4, %v3872_v45 }
 0x105   :  { %199 = vadd.xlane.f32.xlu1 %v198_v48  ;;  %3316 = vmatprep.subr.bf16.mxu1 %v3653_v5 }
 0x106   :  { %3334 = vmatprep.subr.bf16.mxu0 %v3653_v5 }
 0x18e   :  { %v197_v50 = vpop.xlane.xlu1 %196 }
 0x18f   :  { %v210_v53 = vadd.f32 %v3812_v51, %v197_v50 }
 0x191   :  { %v219_v57 = vrot.slane %v210_v53, %v3816_v52 }
 0x192   :  { %v200_v54 = vpop.xlane.xlu1 %199 }
 0x193   :  { %v211_v55 = vadd.f32 %v3812_v51, %v200_v54 }
 0x195   :  { %v223_v56 = vrot.slane %v211_v55, %v3816_v52 }
 0x197   :  { %v225_v58 = vsel %vm224_vm2, %v223_v56, %v219_v57 }
 0x198   :  { %v228_v59 = vsel %vm227_vm3, %v225_v58, -inf }
 0x199   :  { %229 = vmax.xlane.f32.xlu1 %v228_v59 }
 0x226   :  { %v230_v60 = vpop.xlane.xlu1 %229 }
 0x227   :  { %v235_v61 = vrot.slane %v230_v60, %v3754_v14  ;;  %v239_v62 = vrot.slane %v230_v60, %v3757_v15 }
 0x229   :  { %v242_v63 = vsub.f32 %v210_v53, %v235_v61  ;;  %v243_v0 = vsub.f32 %v211_v55, %v239_v62  ;;  %v3902_v55 = vld [vmem:[%s4504_s7] ss:$0 sm:$0xff] }
 0x22b   :  { %v244_v1 = vmul.f32 1.442695, %v242_v63  ;;  %v246_v2 = vmul.f32 1.442695, %v243_v0 }
 0x22d   :  { %3459 = vpow2.f32 %v244_v1 }
 0x22e   :  { %3461 = vpow2.f32 %v246_v2 }
 0x237   :  { %v3460_v3 = vpop.eup %3459 }
 0x238   :  { %v3462_v4 = vpop.eup %3461  ;;  %251 = vperm.xlu1 %3454, %v3460_v3  }
 0x239   :  { %254 = vperm.xlu0 %3453, %v3462_v4  }
 0x23c   :  { %290 = vbcast.lane.b32.xlu1 %v288_v12, 256 }
 0x240   :  { %297 = vbcast.lane.b32.xlu1 %v295_v13, 256 }
 0x2b7   :  { %v252_v16 = vpop.permute.xlu1 %251 }
 0x2b8   :  { %v255_v18 = vpop.permute.xlu0 %254  ;;  %v259_v19 = vrot.slane %v252_v16, %v3816_v52 }
 0x2b9   :  { %v263_v20 = vrot.slane %v255_v18, %v3816_v52 }
 0x2bb   :  { %v264_v22 = vsel %vm224_vm2, %v263_v20, %v259_v19  ;;  %v291_v31 = vpop.permute.xlu1 %290 }
 0x2bc   :  { %v266_v23 = vsel %vm227_vm3, %v264_v22, 0.0 }
 0x2bd   :  { %267 = vadd.xlane.f32.xlu0 %v266_v23 }
 0x2bf   :  { %v298_v39 = vpop.permute.xlu1 %297 }
 0x34a   :  { %v268_v29 = vpop.xlane.xlu0 %267 }
 0x34b   :  { %3463 = vrcp.f32 %v268_v29 }
 0x355   :  { %v3464_v30 = vpop.eup %3463 }
 0x356   :  { %v274_v33 = vrot.slane %v3464_v30, %v3754_v14  ;;  %v278_v34 = vrot.slane %v3464_v30, %v3757_v15 }
 0x358   :  { %v281_v35 = vmul.f32 %v3460_v3, %v274_v33  ;;  %v282_v37 = vmul.f32 %v3462_v4, %v278_v34 }
 0x35a   :  { %v301_v36 = vmul.f32 %v291_v31, %v281_v35  ;;  %v302_v44 = vmul.f32 %v298_v39, %v282_v37 }
 0x35c   :  { %306 = vperm.xlu1 %3454, %v301_v36  }
 0x360   :  { %309 = vperm.xlu1 %3454, %v302_v44  }
 0x3db   :  { %v307_v46 = vpop.permute.xlu1 %306 }
 0x3dc   :  { %v314_v48 = vrot.slane %v307_v46, %v3816_v52 }
 0x3df   :  { %v310_v47 = vpop.permute.xlu1 %309 }
 0x3e0   :  { %v318_v50 = vrot.slane %v310_v47, %v3816_v52 }
 0x3e2   :  { %v3884_v53 = vsel %vm224_vm2, %v318_v50, %v314_v48 }
 0x3e3   :  { %v322_v54 = vsel %vm321_vm5, %v3884_v53, 0.0 }
 0x3e4   :  { %3072 = vmatmul.mubr.msk.f32.vlgmr.msra.gmra.mrb[0].mxu1 %vm329_vm6, %v322_v54 }
 0x3e5   :  { %3318 = vmatpush3.bf16.msra.mxu1 %v3727_v6  ;;  %3090 = vmatprep.mubr.msk.f32.mxu1 %vm3654_vm0, %v3655_v8 }
 0x3e6   :  { %3319 = vmatprep.subr.bf16.mxu1 %v3653_v5 }
 0x3e9   :  { %3321 = vmatpush3.bf16.msra.mxu1 %v3741_v10 }
 0x3ea   :  { %3322 = vmatprep.subr.bf16.mxu1 %v3653_v5 }
 0x3ed   :  { %3324 = vmatpush3.bf16.msra.mxu1 %v3761_v17 }
 0x3ee   :  { %3325 = vmatprep.subr.bf16.mxu1 %v3653_v5 }
 0x3f1   :  { %3327 = vmatpush3.bf16.msra.mxu1 %v3772_v21 }
 0x3f2   :  { %3346 = vmatprep.subr.bf16.mxu1 %v3653_v5 }
 0x4b7   :  { %v403_v56 = vpop.f32.mrb[0].mxu1 }
 0x4b8   :  { %v404_v57 = vadd.f32 %v3902_v55, %v403_v56  ;;  %v3073_v58 = vpop.f32.mrb[1].mxu1 }
 0x4ba   :  { %3465 = vtanh.f32 %v404_v57  ;;  %v2892_v60 = vmul.f32 -1.442695, %v404_v57 }
 0x4bc   :  { %3467 = vpow2.f32 %v2892_v60 }
 0x4c4   :  { %v3466_v59 = vpop.eup %3465 }
 0x4c5   :  { %416 = vrot.lane.b32.xlu1 %v3466_v59, %s3658_s1 }
 0x4c6   :  { %v3468_v61 = vpop.eup %3467 }
 0x4c7   :  { %v410_v62 = vadd.f32 1.0, %v3468_v61 }
 0x4c9   :  { %3469 = vrcp.f32 %v410_v62 }
 0x4d3   :  { %v3470_v63 = vpop.eup %3469 }
 0x4d4   :  { %v414_v2 = vmul.f32 0.0, %v3470_v63 }
 0x537   :  { %v417_v0 = vpop.permute.xlu1 %416 }
 0x538   :  { %v419_v1 = vmul.f32 %v3470_v63, %v417_v0 }
 0x53a   :  { %421 = vrot.lane.b32.xlu1 %v419_v1, %s3659_s24 }
 0x5ac   :  { %v422_v3 = vpop.permute.xlu1 %421 }
 0x5ad   :  { %v3907_v4 = vadd.f32 %v422_v3, %v414_v2 }
 0x5af   :  { %3471 = vtanh.f32 %v3907_v4 }
 0x5b9   :  { %v3472_v12 = vpop.eup %3471 }
 0x5ba   :  { %427 = vrot.lane.b32.xlu0 %v3472_v12, %s3658_s1  ;;  %v627_v12 = vrot.slane %v3829_v7, %v3757_v15 }
 0x62c   :  { %v428_v13 = vpop.permute.xlu0 %427 }
 0x62d   :  { %v3911_v16 = vmul.f32 %v3470_v63, %v428_v13  ;;  %v634_v13 = vrot.slane %v3834_v11, %v3757_v15 }
 0x62f   :  { %432 = vrot.lane.b32.xlu1 %v3911_v16, %s3659_s24 }
 0x6a1   :  { %v3915_v18 = vpop.permute.xlu1 %432 }
 0x6a2   :  { %v436_v19 = vsel %vm435_vm7, %v3915_v18, %v3907_v4 }
 0x6a3   :  { %3091 = vmatmul.mubr.msk.f32.vlgmr.msra.gmra.mrb[2].mxu1 %vm75_vm8, %v436_v19 }
 0x6a4   :  { %3348 = vmatpush3.bf16.msra.mxu1 %v3850_v26  ;;  %3135 = vmatprep.mubr.msk.f32.mxu1 %vm3654_vm0, %v3655_v8 }
 0x6a5   :  { %3349 = vmatprep.subr.bf16.mxu1 %v3653_v5 }
 0x6a8   :  { %3351 = vmatpush3.bf16.msra.mxu1 %v3864_v43 }
 0x6a9   :  { %3133 = vmatprep.subr.mxu1 %v3655_v8 }
 0x6ac   :  { %3134 = vmatpush3.msk.msra.mxu1 %vm333_vm4, %v3872_v45 }
 0x6ad   :  { %3352 = vmatprep.subr.bf16.mxu1 %v3653_v5 }
 0x776   :  { %v506_v20 = vpop.f32.mrb[2].mxu1 }
 0x777   :  { %v507_v22 = vadd.f32 %v3783_v27, %v506_v20  ;;  %v3092_v23 = vpop.f32.mrb[3].mxu1 }
 0x779   :  { %v517_v24 = vrot.slane %v507_v22, %v3786_v28 }
 0x77b   :  { %v518_v25 = vcombine.high %v517_v24, %v517_v24  ;;  %v525_v29 = vrot.slane %v517_v24, %v3786_v28 }
 0x77d   :  { %v532_v30 = vrot.slane %v518_v25, %v3786_v28  ;;  %v536_v31 = vrot.slane %v525_v29, %v3754_v14 }
 0x77f   :  { %v540_v33 = vrot.slane %v532_v30, %v3754_v14  ;;  %v543_v34 = vadd.f32 %v536_v31, %v3789_v32 }
 0x781   :  { %v544_v35 = vadd.f32 %v540_v33, %v3795_v38  ;;  %3473 = vtanh.f32 %v543_v34 }
 0x783   :  { %3475 = vtanh.f32 %v544_v35 }
 0x78b   :  { %v3474_v36 = vpop.eup %3473 }
 0x78c   :  { %v547_v37 = vmul.f32 %v3474_v36, %v3803_v42 }
 0x78d   :  { %v3476_v39 = vpop.eup %3475 }
 0x78e   :  { %v549_v40 = vsel %vm194_vm1, %v547_v37, 0.0  ;;  %v548_v41 = vmul.f32 %v3476_v39, %v3803_v42 }
 0x78f   :  { %550 = vadd.xlane.f32.xlu1 %v549_v40 }
 0x790   :  { %v552_v44 = vsel %vm194_vm1, %v548_v41, 0.0 }
 0x791   :  { %553 = vadd.xlane.f32.xlu0 %v552_v44 }
 0x81c   :  { %v551_v46 = vpop.xlane.xlu1 %550 }
 0x81d   :  { %v555_v47 = vadd.f32 %v551_v46, %v3812_v51 }
 0x81e   :  { %v554_v48 = vpop.xlane.xlu0 %553 }
 0x81f   :  { %v556_v50 = vadd.f32 %v554_v48, %v3812_v51  ;;  %v562_v54 = vrot.slane %v555_v47, %v3816_v52 }
 0x821   :  { %v566_v56 = vrot.slane %v556_v50, %v3816_v52 }
 0x823   :  { %v567_v57 = vsel %vm224_vm2, %v566_v56, %v562_v54 }
 0x824   :  { %v569_v58 = vsel %vm227_vm3, %v567_v57, -inf }
 0x825   :  { %570 = vmax.xlane.f32.xlu1 %v569_v58 }
 0x8b2   :  { %v571_v59 = vpop.xlane.xlu1 %570 }
 0x8b3   :  { %v576_v60 = vrot.slane %v571_v59, %v3754_v14  ;;  %v580_v61 = vrot.slane %v571_v59, %v3757_v15 }
 0x8b5   :  { %v583_v62 = vsub.f32 %v555_v47, %v576_v60  ;;  %v584_v63 = vsub.f32 %v556_v50, %v580_v61 }
 0x8b7   :  { %v585_v0 = vmul.f32 1.442695, %v583_v62  ;;  %v587_v1 = vmul.f32 1.442695, %v584_v63 }
 0x8b9   :  { %3477 = vpow2.f32 %v585_v0 }
 0x8ba   :  { %3479 = vpow2.f32 %v587_v1 }
 0x8c3   :  { %v3478_v2 = vpop.eup %3477 }
 0x8c4   :  { %v3480_v3 = vpop.eup %3479  ;;  %592 = vperm.xlu1 %3454, %v3478_v2  }
 0x8c5   :  { %595 = vperm.xlu0 %3453, %v3480_v3  }
 0x8c9   :  { %629 = vbcast.lane.b32.xlu0 %v627_v12, 256 }
 0x8cd   :  { %636 = vbcast.lane.b32.xlu0 %v634_v13, 256 }
 0x943   :  { %v593_v19 = vpop.permute.xlu1 %592 }
 0x944   :  { %v596_v20 = vpop.permute.xlu0 %595  ;;  %v600_v22 = vrot.slane %v593_v19, %v3816_v52 }
 0x945   :  { %v604_v23 = vrot.slane %v596_v20, %v3816_v52 }
 0x947   :  { %v605_v24 = vsel %vm224_vm2, %v604_v23, %v600_v22 }
 0x948   :  { %v607_v25 = vsel %vm227_vm3, %v605_v24, 0.0  ;;  %v630_v31 = vpop.permute.xlu0 %629 }
 0x949   :  { %608 = vadd.xlane.f32.xlu1 %v607_v25 }
 0x94c   :  { %v637_v39 = vpop.permute.xlu0 %636 }
 0x9d6   :  { %v609_v29 = vpop.xlane.xlu1 %608 }
 0x9d7   :  { %3481 = vrcp.f32 %v609_v29 }
 0x9e1   :  { %v3482_v30 = vpop.eup %3481 }
 0x9e2   :  { %v615_v33 = vrot.slane %v3482_v30, %v3754_v14  ;;  %v619_v34 = vrot.slane %v3482_v30, %v3757_v15 }
 0x9e4   :  { %v622_v35 = vmul.f32 %v3478_v2, %v615_v33  ;;  %v623_v37 = vmul.f32 %v3480_v3, %v619_v34 }
 0x9e6   :  { %v640_v36 = vmul.f32 %v630_v31, %v622_v35  ;;  %v641_v40 = vmul.f32 %v637_v39, %v623_v37 }
 0x9e8   :  { %645 = vperm.xlu0 %3453, %v640_v36  }
 0x9ec   :  { %648 = vperm.xlu0 %3453, %v641_v40  }
 0x9f0   :  { %660 = vrot.lane.b32.xlu0 %v3911_v16, %s3660_s25 }
 0xa67   :  { %v3962_v41 = vpop.permute.xlu0 %645 }
 0xa68   :  { %v653_v46 = vrot.slane %v3962_v41, %v3816_v52 }
 0xa6b   :  { %v3964_v44 = vpop.permute.xlu0 %648 }
 0xa6c   :  { %v657_v47 = vrot.slane %v3964_v44, %v3816_v52 }
 0xa6e   :  { %v658_v48 = vsel %vm224_vm2, %v657_v47, %v653_v46 }
 0xa6f   :  { %v661_v50 = vpop.permute.xlu0 %660 }
 0xa70   :  { %v663_v54 = vsel %vm321_vm5, %v658_v48, %v661_v50 }
 0xa71   :  { %3104 = vmatmul.mubr.msk.f32.vlgmr.msra.gmra.mrb[2].mxu0 %vm329_vm6, %v663_v54 }
 0xa72   :  { %3336 = vmatpush3.bf16.msra.mxu0 %v3727_v6  ;;  %3122 = vmatprep.mubr.msk.f32.mxu0 %vm3654_vm0, %v3655_v8 }
 0xa73   :  { %3337 = vmatprep.subr.bf16.mxu0 %v3653_v5 }
 0xa76   :  { %3339 = vmatpush3.bf16.msra.mxu0 %v3741_v10 }
 0xa77   :  { %3340 = vmatprep.subr.bf16.mxu0 %v3653_v5 }
 0xa7a   :  { %3342 = vmatpush3.bf16.msra.mxu0 %v3761_v17 }
 0xa7b   :  { %3343 = vmatprep.subr.bf16.mxu0 %v3653_v5 }
 0xa7e   :  { %3345 = vmatpush3.bf16.msra.mxu0 %v3772_v21 }
 0xa7f   :  { %3364 = vmatprep.subr.bf16.mxu0 %v3653_v5 }
 0xb44   :  { %v733_v16 = vpop.f32.mrb[2].mxu0 }
 0xb45   :  { %v734_v56 = vadd.f32 %v3902_v55, %v733_v16  ;;  %v3105_v57 = vpop.f32.mrb[3].mxu0 }
 0xb47   :  { %3483 = vtanh.f32 %v734_v56  ;;  %v2896_v59 = vmul.f32 -1.442695, %v734_v56 }
 0xb49   :  { %3485 = vpow2.f32 %v2896_v59 }
 0xb51   :  { %v3484_v58 = vpop.eup %3483 }
 0xb52   :  { %746 = vrot.lane.b32.xlu0 %v3484_v58, %s3658_s1 }
 0xb53   :  { %v3486_v60 = vpop.eup %3485 }
 0xb54   :  { %v740_v61 = vadd.f32 1.0, %v3486_v60 }
 0xb56   :  { %3487 = vrcp.f32 %v740_v61 }
 0xb60   :  { %v3488_v62 = vpop.eup %3487 }
 0xb61   :  { %v744_v1 = vmul.f32 %v3488_v62, %v3907_v4 }
 0xbc4   :  { %v747_v63 = vpop.permute.xlu0 %746 }
 0xbc5   :  { %v749_v0 = vmul.f32 %v3488_v62, %v747_v63 }
 0xbc7   :  { %751 = vrot.lane.b32.xlu0 %v749_v0, %s3659_s24 }
 0xc39   :  { %v752_v2 = vpop.permute.xlu0 %751 }
 0xc3a   :  { %v3987_v3 = vadd.f32 %v752_v2, %v744_v1 }
 0xc3c   :  { %3489 = vtanh.f32 %v3987_v3 }
 0xc46   :  { %v3490_v12 = vpop.eup %3489 }
 0xc47   :  { %757 = vrot.lane.b32.xlu1 %v3490_v12, %s3658_s1 }
 0xcb9   :  { %v758_v13 = vpop.permute.xlu1 %757 }
 0xcba   :  { %v3991_v19 = vmul.f32 %v3488_v62, %v758_v13 }
 0xcbc   :  { %762 = vrot.lane.b32.xlu0 %v3991_v19, %s3659_s24 }
 0xd2e   :  { %v763_v20 = vpop.permute.xlu0 %762 }
 0xd2f   :  { %v765_v22 = vsel %vm435_vm7, %v763_v20, %v3987_v3 }
 0xd30   :  { %3123 = vmatmul.mubr.msk.f32.vlgmr.msra.gmra.mrb[4].mxu0 %vm75_vm8, %v765_v22  ;;  %v955_v22 = vsub.s32 2, %v3735_v9 }
 0xd31   :  { %3366 = vmatpush3.bf16.msra.mxu0 %v3850_v26  ;;  %3167 = vmatprep.mubr.msk.f32.mxu0 %vm3654_vm0, %v3655_v8 }
 0xd32   :  { %3367 = vmatprep.subr.bf16.mxu0 %v3653_v5 }
 0xd35   :  { %3369 = vmatpush3.bf16.msra.mxu0 %v3864_v43 }
 0xd36   :  { %3165 = vmatprep.subr.mxu0 %v3655_v8 }
 0xd39   :  { %3166 = vmatpush3.msk.msra.mxu0 %vm333_vm4, %v3872_v45 }
 0xd3a   :  { %3370 = vmatprep.subr.bf16.mxu0 %v3653_v5 }
 0xe03   :  { %v835_v4 = vpop.f32.mrb[4].mxu0 }
 0xe04   :  { %v836_v23 = vadd.f32 %v3783_v27, %v835_v4  ;;  %v3124_v24 = vpop.f32.mrb[5].mxu0  ;;  %v956_v4 = vrot.slane %v3829_v7, %v955_v22 }
 0xe06   :  { %v846_v25 = vrot.slane %v836_v23, %v3786_v28  ;;  %v963_v23 = vrot.slane %v3834_v11, %v955_v22 }
 0xe08   :  { %v847_v29 = vcombine.high %v846_v25, %v846_v25  ;;  %v854_v30 = vrot.slane %v846_v25, %v3786_v28 }
 0xe0a   :  { %v861_v31 = vrot.slane %v847_v29, %v3786_v28  ;;  %v865_v33 = vrot.slane %v854_v30, %v3754_v14 }
 0xe0c   :  { %v869_v34 = vrot.slane %v861_v31, %v3754_v14  ;;  %v872_v35 = vadd.f32 %v865_v33, %v3789_v32 }
 0xe0e   :  { %v873_v36 = vadd.f32 %v869_v34, %v3795_v38  ;;  %3491 = vtanh.f32 %v872_v35 }
 0xe10   :  { %3493 = vtanh.f32 %v873_v36 }
 0xe18   :  { %v3492_v37 = vpop.eup %3491 }
 0xe19   :  { %v876_v39 = vmul.f32 %v3492_v37, %v3803_v42 }
 0xe1a   :  { %v3494_v40 = vpop.eup %3493 }
 0xe1b   :  { %v878_v46 = vsel %vm194_vm1, %v876_v39, 0.0  ;;  %v877_v47 = vmul.f32 %v3494_v40, %v3803_v42 }
 0xe1c   :  { %879 = vadd.xlane.f32.xlu0 %v878_v46 }
 0xe1d   :  { %v881_v48 = vsel %vm194_vm1, %v877_v47, 0.0 }
 0xe1e   :  { %882 = vadd.xlane.f32.xlu1 %v881_v48 }
 0xea9   :  { %v880_v50 = vpop.xlane.xlu0 %879 }
 0xeaa   :  { %v884_v54 = vadd.f32 %v880_v50, %v3812_v51 }
 0xeab   :  { %v883_v16 = vpop.xlane.xlu1 %882 }
 0xeac   :  { %v885_v56 = vadd.f32 %v883_v16, %v3812_v51  ;;  %v891_v57 = vrot.slane %v884_v54, %v3816_v52 }
 0xeae   :  { %v895_v58 = vrot.slane %v885_v56, %v3816_v52 }
 0xeb0   :  { %v896_v59 = vsel %vm224_vm2, %v895_v58, %v891_v57 }
 0xeb1   :  { %v898_v60 = vsel %vm227_vm3, %v896_v59, -inf }
 0xeb2   :  { %899 = vmax.xlane.f32.xlu0 %v898_v60 }
 0xf3f   :  { %v900_v61 = vpop.xlane.xlu0 %899 }
 0xf40   :  { %v905_v62 = vrot.slane %v900_v61, %v3754_v14  ;;  %v909_v63 = vrot.slane %v900_v61, %v3757_v15 }
 0xf42   :  { %v912_v0 = vsub.f32 %v884_v54, %v905_v62  ;;  %v913_v1 = vsub.f32 %v885_v56, %v909_v63  ;;  %v2746_v54 = vadd.s32 4294967288, %v3810_v49 }
 0xf44   :  { %v914_v2 = vmul.f32 1.442695, %v912_v0  ;;  %v916_v12 = vmul.f32 1.442695, %v913_v1  ;;  %v2749_v56 = vsub.s32 %v2746_v54, %v3735_v9 }
 0xf46   :  { %3495 = vpow2.f32 %v914_v2 }
 0xf47   :  { %3497 = vpow2.f32 %v916_v12 }
 0xf50   :  { %v3496_v13 = vpop.eup %3495 }
 0xf51   :  { %v3498_v20 = vpop.eup %3497  ;;  %921 = vperm.xlu0 %3453, %v3496_v13  }
 0xf52   :  { %924 = vperm.xlu1 %3454, %v3498_v20  }
 0xf56   :  { %958 = vbcast.lane.b32.xlu1 %v956_v4, 256 }
 0xf5a   :  { %965 = vbcast.lane.b32.xlu1 %v963_v23, 256 }
 0xfd0   :  { %v922_v24 = vpop.permute.xlu0 %921 }
 0xfd1   :  { %v925_v25 = vpop.permute.xlu1 %924  ;;  %v929_v29 = vrot.slane %v922_v24, %v3816_v52 }
 0xfd2   :  { %v933_v30 = vrot.slane %v925_v25, %v3816_v52 }
 0xfd4   :  { %v934_v31 = vsel %vm224_vm2, %v933_v30, %v929_v29 }
 0xfd5   :  { %v936_v33 = vsel %vm227_vm3, %v934_v31, 0.0  ;;  %v959_v36 = vpop.permute.xlu1 %958 }
 0xfd6   :  { %937 = vadd.xlane.f32.xlu0 %v936_v33 }
 0xfd9   :  { %v966_v48 = vpop.permute.xlu1 %965 }
0x1063   :  { %v938_v34 = vpop.xlane.xlu0 %937 }
0x1064   :  { %3499 = vrcp.f32 %v938_v34 }
0x106e   :  { %v3500_v35 = vpop.eup %3499 }
0x106f   :  { %v944_v37 = vrot.slane %v3500_v35, %v3754_v14  ;;  %v948_v39 = vrot.slane %v3500_v35, %v3757_v15 }
0x1071   :  { %v951_v40 = vmul.f32 %v3496_v13, %v944_v37  ;;  %v952_v47 = vmul.f32 %v3498_v20, %v948_v39 }
0x1073   :  { %v969_v46 = vmul.f32 %v959_v36, %v951_v40  ;;  %v970_v50 = vmul.f32 %v966_v48, %v952_v47 }
0x1075   :  { %974 = vperm.xlu1 %3454, %v969_v46  }
0x1079   :  { %977 = vperm.xlu1 %3454, %v970_v50  }
0x107d   :  { %989 = vrot.lane.b32.xlu1 %v3991_v19, %s3660_s25 }
0x10f4   :  { %v975_v16 = vpop.permute.xlu1 %974 }
0x10f5   :  { %v982_v58 = vrot.slane %v975_v16, %v3816_v52  ;;  %v2750_v59 = vrot.slane %v975_v16, %v2749_v56 }
0x10f8   :  { %v978_v57 = vpop.permute.xlu1 %977 }
0x10f9   :  { %v986_v60 = vrot.slane %v978_v57, %v3816_v52  ;;  %v2754_v61 = vrot.slane %v978_v57, %v2749_v56 }
0x10fb   :  { %v4043_v62 = vsel %vm224_vm2, %v2754_v61, %v2750_v59  ;;  %v987_v63 = vsel %vm224_vm2, %v986_v60, %v982_v58 }
0x10fc   :  { %v990_v0 = vpop.permute.xlu1 %989 }
0x10fd   :  { %v992_v1 = vsel %vm321_vm5, %v987_v63, %v990_v0 }
0x10fe   :  { %3136 = vmatmul.mubr.msk.f32.vlgmr.msra.gmra.mrb[4].mxu1 %vm329_vm6, %v992_v1 }
0x10ff   :  { %3354 = vmatpush3.bf16.msra.mxu1 %v3727_v6  ;;  %3154 = vmatprep.mubr.msk.f32.mxu1 %vm3654_vm0, %v3655_v8 }
0x1100   :  { %3355 = vmatprep.subr.bf16.mxu1 %v3653_v5 }
0x1103   :  { %3357 = vmatpush3.bf16.msra.mxu1 %v3741_v10 }
0x1104   :  { %3358 = vmatprep.subr.bf16.mxu1 %v3653_v5 }
0x1107   :  { %3360 = vmatpush3.bf16.msra.mxu1 %v3761_v17 }
0x1108   :  { %3361 = vmatprep.subr.bf16.mxu1 %v3653_v5 }
0x110b   :  { %3363 = vmatpush3.bf16.msra.mxu1 %v3772_v21 }
0x110c   :  { %3382 = vmatprep.subr.bf16.mxu1 %v3653_v5 }
0x11d1   :  { %v1062_v2 = vpop.f32.mrb[4].mxu1 }
0x11d2   :  { %v1063_v12 = vadd.f32 %v3902_v55, %v1062_v2  ;;  %v3137_v13 = vpop.f32.mrb[5].mxu1 }
0x11d4   :  { %3501 = vtanh.f32 %v1063_v12  ;;  %v2900_v22 = vmul.f32 -1.442695, %v1063_v12 }
0x11d6   :  { %3503 = vpow2.f32 %v2900_v22 }
0x11de   :  { %v3502_v20 = vpop.eup %3501 }
0x11df   :  { %1075 = vrot.lane.b32.xlu1 %v3502_v20, %s3658_s1 }
0x11e0   :  { %v3504_v4 = vpop.eup %3503 }
0x11e1   :  { %v1069_v23 = vadd.f32 1.0, %v3504_v4 }
0x11e3   :  { %3505 = vrcp.f32 %v1069_v23 }
0x11ed   :  { %v3506_v24 = vpop.eup %3505 }
0x11ee   :  { %v1073_v30 = vmul.f32 %v3506_v24, %v3987_v3 }
0x1251   :  { %v1076_v25 = vpop.permute.xlu1 %1075 }
0x1252   :  { %v1078_v29 = vmul.f32 %v3506_v24, %v1076_v25 }
0x1254   :  { %1080 = vrot.lane.b32.xlu1 %v1078_v29, %s3659_s24 }
0x12c6   :  { %v1081_v31 = vpop.permute.xlu1 %1080 }
0x12c7   :  { %v4062_v33 = vadd.f32 %v1081_v31, %v1073_v30 }
0x12c9   :  { %3507 = vtanh.f32 %v4062_v33 }
0x12d3   :  { %v3508_v34 = vpop.eup %3507 }
0x12d4   :  { %1086 = vrot.lane.b32.xlu0 %v3508_v34, %s3658_s1 }
0x1346   :  { %v1087_v35 = vpop.permute.xlu0 %1086 }
0x1347   :  { %v4066_v36 = vmul.f32 %v3506_v24, %v1087_v35 }
0x1349   :  { %1091 = vrot.lane.b32.xlu1 %v4066_v36, %s3659_s24 }
0x13bb   :  { %v1092_v37 = vpop.permute.xlu1 %1091 }
0x13bc   :  { %v1094_v39 = vsel %vm435_vm7, %v1092_v37, %v4062_v33 }
0x13bd   :  { %3155 = vmatmul.mubr.msk.f32.vlgmr.msra.gmra.mrb[6].mxu1 %vm75_vm8, %v1094_v39  ;;  %v1284_v39 = vsub.s32 3, %v3735_v9 }
0x13be   :  { %3384 = vmatpush3.bf16.msra.mxu1 %v3850_v26  ;;  %3199 = vmatprep.mubr.msk.f32.mxu1 %vm3654_vm0, %v3655_v8 }
0x13bf   :  { %3385 = vmatprep.subr.bf16.mxu1 %v3653_v5 }
0x13c2   :  { %3387 = vmatpush3.bf16.msra.mxu1 %v3864_v43 }
0x13c3   :  { %3197 = vmatprep.subr.mxu1 %v3655_v8 }
0x13c6   :  { %3198 = vmatpush3.msk.msra.mxu1 %vm333_vm4, %v3872_v45 }
0x13c7   :  { %3388 = vmatprep.subr.bf16.mxu1 %v3653_v5 }
0x1490   :  { %v1164_v3 = vpop.f32.mrb[6].mxu1 }
0x1491   :  { %v1165_v40 = vadd.f32 %v3783_v27, %v1164_v3  ;;  %v3156_v46 = vpop.f32.mrb[7].mxu1  ;;  %v1285_v3 = vrot.slane %v3829_v7, %v1284_v39 }
0x1493   :  { %v1175_v47 = vrot.slane %v1165_v40, %v3786_v28  ;;  %v1292_v40 = vrot.slane %v3834_v11, %v1284_v39 }
0x1495   :  { %v1176_v48 = vcombine.high %v1175_v47, %v1175_v47  ;;  %v1183_v50 = vrot.slane %v1175_v47, %v3786_v28 }
0x1497   :  { %v1190_v54 = vrot.slane %v1176_v48, %v3786_v28  ;;  %v1194_v16 = vrot.slane %v1183_v50, %v3754_v14 }
0x1499   :  { %v1198_v56 = vrot.slane %v1190_v54, %v3754_v14  ;;  %v1201_v57 = vadd.f32 %v1194_v16, %v3789_v32 }
0x149b   :  { %v1202_v58 = vadd.f32 %v1198_v56, %v3795_v38  ;;  %3509 = vtanh.f32 %v1201_v57 }
0x149d   :  { %3511 = vtanh.f32 %v1202_v58 }
0x14a5   :  { %v3510_v59 = vpop.eup %3509 }
0x14a6   :  { %v1205_v27 = vmul.f32 %v3510_v59, %v3803_v42 }
0x14a7   :  { %v3512_v60 = vpop.eup %3511 }
0x14a8   :  { %v1207_v61 = vsel %vm194_vm1, %v1205_v27, 0.0  ;;  %v1206_v63 = vmul.f32 %v3512_v60, %v3803_v42 }
0x14a9   :  { %1208 = vadd.xlane.f32.xlu1 %v1207_v61 }
0x14aa   :  { %v1210_v0 = vsel %vm194_vm1, %v1206_v63, 0.0 }
0x14ab   :  { %1211 = vadd.xlane.f32.xlu0 %v1210_v0  ;;  %v2735_v0 = vadd.s32 4294967292, %v3810_v49 }
0x1536   :  { %v1209_v1 = vpop.xlane.xlu1 %1208 }
0x1537   :  { %v1213_v2 = vadd.f32 %v1209_v1, %v3812_v51  ;;  %v2738_v1 = vsub.s32 %v2735_v0, %v3735_v9 }
0x1538   :  { %v1212_v12 = vpop.xlane.xlu0 %1211 }
0x1539   :  { %v1214_v13 = vadd.f32 %v1212_v12, %v3812_v51  ;;  %v1220_v20 = vrot.slane %v1213_v2, %v3816_v52  ;;  %v2743_v12 = vrot.slane %v3964_v44, %v2738_v1 }
0x153b   :  { %v1224_v22 = vrot.slane %v1214_v13, %v3816_v52 }
0x153d   :  { %v1225_v4 = vsel %vm224_vm2, %v1224_v22, %v1220_v20  ;;  %v2739_v20 = vrot.slane %v3962_v41, %v2738_v1 }
0x153e   :  { %v1227_v23 = vsel %vm227_vm3, %v1225_v4, -inf }
0x153f   :  { %1228 = vmax.xlane.f32.xlu1 %v1227_v23  ;;  %v2744_v4 = vsel %vm224_vm2, %v2743_v12, %v2739_v20 }
0x15cc   :  { %v1229_v42 = vpop.xlane.xlu1 %1228 }
0x15cd   :  { %v1234_v24 = vrot.slane %v1229_v42, %v3754_v14  ;;  %v1238_v25 = vrot.slane %v1229_v42, %v3757_v15 }
0x15cf   :  { %v1241_v29 = vsub.f32 %v1213_v2, %v1234_v24  ;;  %v1242_v30 = vsub.f32 %v1214_v13, %v1238_v25  ;;  %v2757_v2 = vadd.s32 4294967284, %v3810_v49 }
0x15d1   :  { %v1243_v31 = vmul.f32 1.442695, %v1241_v29  ;;  %v1245_v34 = vmul.f32 1.442695, %v1242_v30  ;;  %v2760_v22 = vsub.s32 %v2757_v2, %v3735_v9  ;;  %v2812_v30 = vsel %vm321_vm5, %v3884_v53, %v2744_v4  ;;  %v4181_v4 = vld [vmem:[%s4501_s4] ss:$0 sm:$0xff] }
0x15d2   :  { %v2814_v44 = vsel %vm2813_vm9, %v2812_v30, %v4043_v62 }
0x15d3   :  { %3513 = vpow2.f32 %v1243_v31 }
0x15d4   :  { %3515 = vpow2.f32 %v1245_v34 }
0x15dd   :  { %v3514_v35 = vpop.eup %3513 }
0x15de   :  { %v3516_v37 = vpop.eup %3515  ;;  %1250 = vperm.xlu1 %3454, %v3514_v35  }
0x15df   :  { %1253 = vperm.xlu0 %3453, %v3516_v37  }
0x15e3   :  { %1287 = vbcast.lane.b32.xlu0 %v1285_v3, 256 }
0x15e7   :  { %1294 = vbcast.lane.b32.xlu0 %v1292_v40, 256 }
0x165d   :  { %v1251_v46 = vpop.permute.xlu1 %1250 }
0x165e   :  { %v1254_v47 = vpop.permute.xlu0 %1253  ;;  %v1258_v48 = vrot.slane %v1251_v46, %v3816_v52 }
0x165f   :  { %v1262_v50 = vrot.slane %v1254_v47, %v3816_v52 }
0x1661   :  { %v1263_v54 = vsel %vm224_vm2, %v1262_v50, %v1258_v48 }
0x1662   :  { %v1265_v16 = vsel %vm227_vm3, %v1263_v54, 0.0  ;;  %v1288_v58 = vpop.permute.xlu0 %1287 }
0x1663   :  { %1266 = vadd.xlane.f32.xlu1 %v1265_v16 }
0x1666   :  { %v1295_v61 = vpop.permute.xlu0 %1294 }
0x16f0   :  { %v1267_v56 = vpop.xlane.xlu1 %1266 }
0x16f1   :  { %3517 = vrcp.f32 %v1267_v56 }
0x16fb   :  { %v3518_v57 = vpop.eup %3517 }
0x16fc   :  { %v1273_v7 = vrot.slane %v3518_v57, %v3754_v14  ;;  %v1277_v11 = vrot.slane %v3518_v57, %v3757_v15 }
0x16fe   :  { %v1280_v59 = vmul.f32 %v3514_v35, %v1273_v7  ;;  %v1281_v60 = vmul.f32 %v3516_v37, %v1277_v11 }
0x1700   :  { %v1298_v27 = vmul.f32 %v1288_v58, %v1280_v59  ;;  %v1299_v63 = vmul.f32 %v1295_v61, %v1281_v60 }
0x1702   :  { %1303 = vperm.xlu0 %3453, %v1298_v27   ;;  %v4168_v27 = vld [vmem:[%s4500_s3] ss:$0 sm:$0xff] }
0x1706   :  { %1306 = vperm.xlu0 %3453, %v1299_v63  }
0x170a   :  { %1318 = vrot.lane.b32.xlu0 %v4066_v36, %s3660_s25 }
0x1781   :  { %v1304_v13 = vpop.permute.xlu0 %1303 }
0x1782   :  { %v1311_v42 = vrot.slane %v1304_v13, %v3816_v52  ;;  %v2761_v24 = vrot.slane %v1304_v13, %v2760_v22 }
0x1785   :  { %v1307_v23 = vpop.permute.xlu0 %1306 }
0x1786   :  { %v1315_v25 = vrot.slane %v1307_v23, %v3816_v52  ;;  %v2765_v29 = vrot.slane %v1307_v23, %v2760_v22 }
0x1788   :  { %v2766_v41 = vsel %vm224_vm2, %v2765_v29, %v2761_v24  ;;  %v1316_v31 = vsel %vm224_vm2, %v1315_v25, %v1311_v42 }
0x1789   :  { %v4127_v34 = vsel %vm2815_vm10, %v2814_v44, %v2766_v41  ;;  %v1319_v35 = vpop.permute.xlu0 %1318 }
0x178a   :  { %v1321_v37 = vsel %vm321_vm5, %v1316_v31, %v1319_v35 }
0x178b   :  { %3168 = vmatmul.mubr.msk.f32.vlgmr.msra.gmra.mrb[6].mxu0 %vm329_vm6, %v1321_v37 }
0x178c   :  { %3372 = vmatpush3.bf16.msra.mxu0 %v3727_v6  ;;  %3186 = vmatprep.mubr.msk.f32.mxu0 %vm3654_vm0, %v3655_v8 }
0x178d   :  { %3373 = vmatprep.subr.bf16.mxu0 %v3653_v5 }
0x1790   :  { %3375 = vmatpush3.bf16.msra.mxu0 %v3741_v10 }
0x1791   :  { %3376 = vmatprep.subr.bf16.mxu0 %v3653_v5 }
0x1794   :  { %3378 = vmatpush3.bf16.msra.mxu0 %v3761_v17 }
0x1795   :  { %3379 = vmatprep.subr.bf16.mxu0 %v3653_v5 }
0x1798   :  { %3381 = vmatpush3.bf16.msra.mxu0 %v3772_v21 }
0x1799   :  { %3400 = vmatprep.subr.bf16.mxu0 %v3653_v5 }
0x185e   :  { %v1391_v53 = vpop.f32.mrb[6].mxu0 }
0x185f   :  { %v1392_v62 = vadd.f32 %v3902_v55, %v1391_v53  ;;  %v3169_v39 = vpop.f32.mrb[7].mxu0 }
0x1861   :  { %3519 = vtanh.f32 %v1392_v62  ;;  %v2904_v40 = vmul.f32 -1.442695, %v1392_v62 }
0x1863   :  { %3521 = vpow2.f32 %v2904_v40 }
0x186b   :  { %v3520_v3 = vpop.eup %3519 }
0x186c   :  { %1404 = vrot.lane.b32.xlu0 %v3520_v3, %s3658_s1 }
0x186d   :  { %v3522_v46 = vpop.eup %3521 }
0x186e   :  { %v1398_v47 = vadd.f32 1.0, %v3522_v46 }
0x1870   :  { %3523 = vrcp.f32 %v1398_v47 }
0x187a   :  { %v3524_v48 = vpop.eup %3523 }
0x187b   :  { %v1402_v16 = vmul.f32 %v3524_v48, %v4062_v33 }
0x18de   :  { %v1405_v50 = vpop.permute.xlu0 %1404 }
0x18df   :  { %v1407_v54 = vmul.f32 %v3524_v48, %v1405_v50 }
0x18e1   :  { %1409 = vrot.lane.b32.xlu0 %v1407_v54, %s3659_s24 }
0x1953   :  { %v1410_v56 = vpop.permute.xlu0 %1409 }
0x1954   :  { %v4145_v57 = vadd.f32 %v1410_v56, %v1402_v16  ;;  %v1613_v56 = vsub.s32 4, %v3735_v9 }
0x1956   :  { %3525 = vtanh.f32 %v4145_v57 }
0x1960   :  { %v3526_v55 = vpop.eup %3525 }
0x1961   :  { %1415 = vrot.lane.b32.xlu1 %v3526_v55, %s3658_s1  ;;  %v4199_v55 = vld [vmem:[%s4497_s0] sm:$0xff] }
0x19d3   :  { %v1416_v58 = vpop.permute.xlu1 %1415 }
0x19d4   :  { %v4149_v7 = vmul.f32 %v3524_v48, %v1416_v58  ;;  %v1614_v58 = vrot.slane %v4199_v55, %v1613_v56 }
0x19d6   :  { %1420 = vrot.lane.b32.xlu0 %v4149_v7, %s3659_s24 }
0x1a48   :  { %v1421_v11 = vpop.permute.xlu0 %1420 }
0x1a49   :  { %v1423_v59 = vsel %vm435_vm7, %v1421_v11, %v4145_v57  ;;  %v4205_v11 = vld [vmem:[%s4497_s0 + $0x8] sm:$0xff] }
0x1a4a   :  { %3187 = vmatmul.mubr.msk.f32.vlgmr.msra.gmra.mrb[8].mxu0 %vm75_vm8, %v1423_v59  ;;  %v1621_v59 = vrot.slane %v4205_v11, %v1613_v56 }
0x1a4b   :  { %3402 = vmatpush3.bf16.msra.mxu0 %v3850_v26  ;;  %3231 = vmatprep.mubr.msk.f32.mxu0 %vm3654_vm0, %v3655_v8 }
0x1a4c   :  { %3403 = vmatprep.subr.bf16.mxu0 %v3653_v5 }
0x1a4f   :  { %3405 = vmatpush3.bf16.msra.mxu0 %v3864_v43 }
0x1a50   :  { %3229 = vmatprep.subr.mxu0 %v3655_v8 }
0x1a53   :  { %3230 = vmatpush3.msk.msra.mxu0 %vm333_vm4, %v3872_v45 }
0x1a54   :  { %3406 = vmatprep.subr.bf16.mxu0 %v3653_v5 }
0x1b1d   :  { %v1493_v33 = vpop.f32.mrb[8].mxu0 }
0x1b1e   :  { %v1494_v60 = vadd.f32 %v4168_v27, %v1493_v33  ;;  %v3188_v61 = vpop.f32.mrb[9].mxu0 }
0x1b20   :  { %v1504_v63 = vrot.slane %v1494_v60, %v3786_v28 }
0x1b22   :  { %v1505_v0 = vcombine.high %v1504_v63, %v1504_v63  ;;  %v1512_v1 = vrot.slane %v1504_v63, %v3786_v28 }
0x1b24   :  { %v1519_v2 = vrot.slane %v1505_v0, %v3786_v28  ;;  %v1523_v45 = vrot.slane %v1512_v1, %v3754_v14 }
0x1b26   :  { %v1527_v12 = vrot.slane %v1519_v2, %v3754_v14  ;;  %v1530_v13 = vadd.f32 %v1523_v45, %v3789_v32 }
0x1b28   :  { %v1531_v20 = vadd.f32 %v1527_v12, %v3795_v38  ;;  %3527 = vtanh.f32 %v1530_v13 }
0x1b2a   :  { %3529 = vtanh.f32 %v1531_v20 }
0x1b32   :  { %v3528_v22 = vpop.eup %3527 }
0x1b33   :  { %v1534_v23 = vmul.f32 %v4181_v4, %v3528_v22 }
0x1b34   :  { %v3530_v42 = vpop.eup %3529 }
0x1b35   :  { %v1536_v24 = vsel %vm194_vm1, %v1534_v23, 0.0  ;;  %v1535_v25 = vmul.f32 %v4181_v4, %v3530_v42 }
0x1b36   :  { %1537 = vadd.xlane.f32.xlu0 %v1536_v24 }
0x1b37   :  { %v1539_v29 = vsel %vm194_vm1, %v1535_v25, 0.0 }
0x1b38   :  { %1540 = vadd.xlane.f32.xlu1 %v1539_v29  ;;  %v2768_v29 = vadd.s32 4294967280, %v3810_v49 }
0x1bc3   :  { %v1538_v30 = vpop.xlane.xlu0 %1537 }
0x1bc4   :  { %v1542_v44 = vadd.f32 %v1538_v30, %v3812_v51 }
0x1bc5   :  { %v1541_v41 = vpop.xlane.xlu1 %1540 }
0x1bc6   :  { %v1543_v31 = vadd.f32 %v1541_v41, %v3812_v51  ;;  %v1549_v35 = vrot.slane %v1542_v44, %v3816_v52 }
0x1bc8   :  { %v1553_v37 = vrot.slane %v1543_v31, %v3816_v52 }
0x1bca   :  { %v1554_v53 = vsel %vm224_vm2, %v1553_v37, %v1549_v35 }
0x1bcb   :  { %v1556_v62 = vsel %vm227_vm3, %v1554_v53, -inf }
0x1bcc   :  { %1557 = vmax.xlane.f32.xlu0 %v1556_v62 }
0x1c59   :  { %v1558_v39 = vpop.xlane.xlu0 %1557 }
0x1c5a   :  { %v1563_v3 = vrot.slane %v1558_v39, %v3754_v14  ;;  %v1567_v40 = vrot.slane %v1558_v39, %v3757_v15 }
0x1c5c   :  { %v1570_v46 = vsub.f32 %v1542_v44, %v1563_v3  ;;  %v1571_v47 = vsub.f32 %v1543_v31, %v1567_v40  ;;  %v2771_v44 = vsub.s32 %v2768_v29, %v3735_v9 }
0x1c5e   :  { %v1572_v48 = vmul.f32 1.442695, %v1570_v46  ;;  %v1574_v50 = vmul.f32 1.442695, %v1571_v47  ;;  %v4240_v47 = vld [vmem:[%s4504_s7] ss:$0 sm:$0xff] }
0x1c60   :  { %3531 = vpow2.f32 %v1572_v48 }
0x1c61   :  { %3533 = vpow2.f32 %v1574_v50 }
0x1c6a   :  { %v3532_v54 = vpop.eup %3531 }
0x1c6b   :  { %v3534_v16 = vpop.eup %3533  ;;  %1579 = vperm.xlu0 %3453, %v3532_v54  }
0x1c6c   :  { %1582 = vperm.xlu1 %3454, %v3534_v16  }
0x1c70   :  { %1616 = vbcast.lane.b32.xlu1 %v1614_v58, 256 }
0x1c74   :  { %1623 = vbcast.lane.b32.xlu1 %v1621_v59, 256 }
0x1cea   :  { %v1580_v33 = vpop.permute.xlu0 %1579 }
0x1ceb   :  { %v1583_v60 = vpop.permute.xlu1 %1582  ;;  %v1587_v61 = vrot.slane %v1580_v33, %v3816_v52 }
0x1cec   :  { %v1591_v63 = vrot.slane %v1583_v60, %v3816_v52 }
0x1cee   :  { %v1592_v0 = vsel %vm224_vm2, %v1591_v63, %v1587_v61 }
0x1cef   :  { %v1594_v1 = vsel %vm227_vm3, %v1592_v0, 0.0  ;;  %v1617_v12 = vpop.permute.xlu1 %1616 }
0x1cf0   :  { %1595 = vadd.xlane.f32.xlu0 %v1594_v1 }
0x1cf3   :  { %v1624_v24 = vpop.permute.xlu1 %1623 }
0x1d7d   :  { %v1596_v2 = vpop.xlane.xlu0 %1595 }
0x1d7e   :  { %3535 = vrcp.f32 %v1596_v2 }
0x1d88   :  { %v3536_v45 = vpop.eup %3535 }
0x1d89   :  { %v1602_v13 = vrot.slane %v3536_v45, %v3754_v14  ;;  %v1606_v20 = vrot.slane %v3536_v45, %v3757_v15 }
0x1d8b   :  { %v1609_v22 = vmul.f32 %v3532_v54, %v1602_v13  ;;  %v1610_v42 = vmul.f32 %v3534_v16, %v1606_v20  ;;  %v4269_v13 = vld [vmem:[%s4503_s6 + $0x20] sm:$0xf]  ;;  %s3661_s6 = smov 96  }
0x1d8d   :  { %v1627_v23 = vmul.f32 %v1617_v12, %v1609_v22  ;;  %v1628_v25 = vmul.f32 %v1624_v24, %v1610_v42 }
0x1d8f   :  { %1632 = vperm.xlu1 %3454, %v1627_v23  }
0x1d93   :  { %1635 = vperm.xlu1 %3454, %v1628_v25  }
0x1d97   :  { %1647 = vrot.lane.b32.xlu1 %v4149_v7, %s3660_s25 }
0x1e0e   :  { %v1633_v30 = vpop.permute.xlu1 %1632 }
0x1e0f   :  { %v1640_v31 = vrot.slane %v1633_v30, %v3816_v52  ;;  %v2772_v35 = vrot.slane %v1633_v30, %v2771_v44 }
0x1e12   :  { %v1636_v41 = vpop.permute.xlu1 %1635 }
0x1e13   :  { %v1644_v37 = vrot.slane %v1636_v41, %v3816_v52  ;;  %v2776_v53 = vrot.slane %v1636_v41, %v2771_v44 }
0x1e15   :  { %v2777_v62 = vsel %vm224_vm2, %v2776_v53, %v2772_v35  ;;  %v1645_v39 = vsel %vm224_vm2, %v1644_v37, %v1640_v31 }
0x1e16   :  { %v1648_v3 = vpop.permute.xlu1 %1647  ;;  %v4223_v40 = vsel %vm2817_vm11, %v4127_v34, %v2777_v62 }
0x1e17   :  { %v1650_v46 = vsel %vm321_vm5, %v1645_v39, %v1648_v3 }
0x1e18   :  { %3200 = vmatmul.mubr.msk.f32.vlgmr.msra.gmra.mrb[8].mxu1 %vm329_vm6, %v1650_v46 }
0x1e19   :  { %3390 = vmatpush3.bf16.msra.mxu1 %v3727_v6  ;;  %3218 = vmatprep.mubr.msk.f32.mxu1 %vm3654_vm0, %v3655_v8 }
0x1e1a   :  { %3391 = vmatprep.subr.bf16.mxu1 %v3653_v5 }
0x1e1d   :  { %3393 = vmatpush3.bf16.msra.mxu1 %v3741_v10 }
0x1e1e   :  { %3394 = vmatprep.subr.bf16.mxu1 %v3653_v5 }
0x1e21   :  { %3396 = vmatpush3.bf16.msra.mxu1 %v3761_v17 }
0x1e22   :  { %3397 = vmatprep.subr.bf16.mxu1 %v3653_v5 }
0x1e25   :  { %3399 = vmatpush3.bf16.msra.mxu1 %v3772_v21 }
0x1e26   :  { %3418 = vmatprep.subr.bf16.mxu1 %v3653_v5 }
0x1eeb   :  { %v1720_v34 = vpop.f32.mrb[8].mxu1 }
0x1eec   :  { %v1721_v48 = vadd.f32 %v4240_v47, %v1720_v34  ;;  %v3201_v50 = vpop.f32.mrb[9].mxu1 }
0x1eee   :  { %3537 = vtanh.f32 %v1721_v48  ;;  %v2908_v16 = vmul.f32 -1.442695, %v1721_v48 }
0x1ef0   :  { %3539 = vpow2.f32 %v2908_v16 }
0x1ef8   :  { %v3538_v54 = vpop.eup %3537 }
0x1ef9   :  { %1733 = vrot.lane.b32.xlu1 %v3538_v54, %s3658_s1 }
0x1efa   :  { %v3540_v56 = vpop.eup %3539 }
0x1efb   :  { %v1727_v58 = vadd.f32 1.0, %v3540_v56 }
0x1efd   :  { %3541 = vrcp.f32 %v1727_v58 }
0x1f07   :  { %v3542_v59 = vpop.eup %3541 }
0x1f08   :  { %v1731_v61 = vmul.f32 %v3542_v59, %v4145_v57 }
0x1f6b   :  { %v1734_v33 = vpop.permute.xlu1 %1733 }
0x1f6c   :  { %v1736_v60 = vmul.f32 %v3542_v59, %v1734_v33 }
0x1f6e   :  { %1738 = vrot.lane.b32.xlu1 %v1736_v60, %s3659_s24 }
0x1fe0   :  { %v1739_v63 = vpop.permute.xlu1 %1738 }
0x1fe1   :  { %v4246_v0 = vadd.f32 %v1739_v63, %v1731_v61 }
0x1fe3   :  { %3543 = vtanh.f32 %v4246_v0 }
0x1fed   :  { %v3544_v1 = vpop.eup %3543 }
0x1fee   :  { %1744 = vrot.lane.b32.xlu0 %v3544_v1, %s3658_s1 }
0x2060   :  { %v1745_v2 = vpop.permute.xlu0 %1744 }
0x2061   :  { %v4250_v45 = vmul.f32 %v3542_v59, %v1745_v2 }
0x2063   :  { %1749 = vrot.lane.b32.xlu1 %v4250_v45, %s3659_s24 }
0x20d5   :  { %v4254_v12 = vpop.permute.xlu1 %1749 }
0x20d6   :  { %v1752_v57 = vsel %vm435_vm7, %v4254_v12, %v4246_v0 }
0x20d7   :  { %3219 = vmatmul.mubr.msk.f32.vlgmr.msra.gmra.mrb[10].mxu1 %vm75_vm8, %v1752_v57 }
0x20d8   :  { %3420 = vmatpush3.bf16.msra.mxu1 %v3850_v26  ;;  %3263 = vmatprep.mubr.msk.f32.mxu1 %vm3654_vm0, %v3655_v8 }
0x20d9   :  { %3421 = vmatprep.subr.bf16.mxu1 %v3653_v5 }
0x20dc   :  { %3423 = vmatpush3.bf16.msra.mxu1 %v3864_v43 }
0x20dd   :  { %3261 = vmatprep.subr.mxu1 %v3655_v8 }
0x20e0   :  { %3262 = vmatpush3.msk.msra.mxu1 %vm333_vm4, %v4269_v13 }
0x20e1   :  { %3424 = vmatprep.subr.bf16.mxu1 %v3653_v5 }
0x21aa   :  { %v1822_v20 = vpop.f32.mrb[10].mxu1 }
0x21ab   :  { %v1823_v22 = vadd.f32 %v4168_v27, %v1822_v20  ;;  %v3220_v23 = vpop.f32.mrb[11].mxu1 }
0x21ad   :  { %v1833_v42 = vrot.slane %v1823_v22, %v3786_v28  ;;  %v1942_v22 = vsub.s32 5, %v3735_v9 }
0x21af   :  { %v1834_v24 = vcombine.high %v1833_v42, %v1833_v42  ;;  %v1841_v25 = vrot.slane %v1833_v42, %v3786_v28  ;;  %v1943_v23 = vrot.slane %v4199_v55, %v1942_v22  ;;  %v1950_v42 = vrot.slane %v4205_v11, %v1942_v22 }
0x21b1   :  { %v1848_v29 = vrot.slane %v1834_v24, %v3786_v28  ;;  %v1852_v30 = vrot.slane %v1841_v25, %v3754_v14 }
0x21b3   :  { %v1856_v44 = vrot.slane %v1848_v29, %v3754_v14  ;;  %v1859_v41 = vadd.f32 %v1852_v30, %v3789_v32 }
0x21b5   :  { %v1860_v31 = vadd.f32 %v1856_v44, %v3795_v38  ;;  %3545 = vtanh.f32 %v1859_v41 }
0x21b7   :  { %3547 = vtanh.f32 %v1860_v31 }
0x21bf   :  { %v3546_v35 = vpop.eup %3545 }
0x21c0   :  { %v1863_v37 = vmul.f32 %v4181_v4, %v3546_v35 }
0x21c1   :  { %v3548_v53 = vpop.eup %3547 }
0x21c2   :  { %v1865_v62 = vsel %vm194_vm1, %v1863_v37, 0.0  ;;  %v1864_v39 = vmul.f32 %v4181_v4, %v3548_v53 }
0x21c3   :  { %1866 = vadd.xlane.f32.xlu1 %v1865_v62 }
0x21c4   :  { %v1868_v3 = vsel %vm194_vm1, %v1864_v39, 0.0 }
0x21c5   :  { %1869 = vadd.xlane.f32.xlu0 %v1868_v3 }
0x2250   :  { %v1867_v46 = vpop.xlane.xlu1 %1866 }
0x2251   :  { %v1871_v34 = vadd.f32 %v1867_v46, %v3812_v51 }
0x2252   :  { %v1870_v48 = vpop.xlane.xlu0 %1869 }
0x2253   :  { %v1872_v50 = vadd.f32 %v1870_v48, %v3812_v51  ;;  %v1878_v54 = vrot.slane %v1871_v34, %v3816_v52 }
0x2255   :  { %v1882_v16 = vrot.slane %v1872_v50, %v3816_v52 }
0x2257   :  { %v1883_v56 = vsel %vm224_vm2, %v1882_v16, %v1878_v54 }
0x2258   :  { %v1885_v58 = vsel %vm227_vm3, %v1883_v56, -inf }
0x2259   :  { %1886 = vmax.xlane.f32.xlu1 %v1885_v58 }
0x22e6   :  { %v1887_v59 = vpop.xlane.xlu1 %1886 }
0x22e7   :  { %v1892_v33 = vrot.slane %v1887_v59, %v3754_v14  ;;  %v1896_v60 = vrot.slane %v1887_v59, %v3757_v15 }
0x22e9   :  { %v1899_v61 = vsub.f32 %v1871_v34, %v1892_v33  ;;  %v1900_v63 = vsub.f32 %v1872_v50, %v1896_v60  ;;  %v2779_v50 = vadd.s32 4294967276, %v3810_v49 }
0x22eb   :  { %v1901_v1 = vmul.f32 1.442695, %v1899_v61  ;;  %v1903_v2 = vmul.f32 1.442695, %v1900_v63  ;;  %v2782_v16 = vsub.s32 %v2779_v50, %v3735_v9 }
0x22ed   :  { %3549 = vpow2.f32 %v1901_v1 }
0x22ee   :  { %3551 = vpow2.f32 %v1903_v2 }
0x22f7   :  { %v3550_v57 = vpop.eup %3549 }
0x22f8   :  { %v3552_v20 = vpop.eup %3551  ;;  %1908 = vperm.xlu1 %3454, %v3550_v57  }
0x22f9   :  { %1911 = vperm.xlu0 %3453, %v3552_v20  }
0x22fd   :  { %1945 = vbcast.lane.b32.xlu0 %v1943_v23, 256 }
0x2301   :  { %1952 = vbcast.lane.b32.xlu0 %v1950_v42, 256 }
0x2377   :  { %v1909_v24 = vpop.permute.xlu1 %1908 }
0x2378   :  { %v1912_v25 = vpop.permute.xlu0 %1911  ;;  %v1916_v29 = vrot.slane %v1909_v24, %v3816_v52 }
0x2379   :  { %v1920_v30 = vrot.slane %v1912_v25, %v3816_v52 }
0x237b   :  { %v1921_v44 = vsel %vm224_vm2, %v1920_v30, %v1916_v29 }
0x237c   :  { %v1923_v41 = vsel %vm227_vm3, %v1921_v44, 0.0  ;;  %v1946_v37 = vpop.permute.xlu0 %1945 }
0x237d   :  { %1924 = vadd.xlane.f32.xlu1 %v1923_v41 }
0x2380   :  { %v1953_v34 = vpop.permute.xlu0 %1952 }
0x240a   :  { %v1925_v31 = vpop.xlane.xlu1 %1924 }
0x240b   :  { %3553 = vrcp.f32 %v1925_v31 }
0x2415   :  { %v3554_v35 = vpop.eup %3553 }
0x2416   :  { %v1931_v53 = vrot.slane %v3554_v35, %v3754_v14  ;;  %v1935_v62 = vrot.slane %v3554_v35, %v3757_v15 }
0x2418   :  { %v1938_v39 = vmul.f32 %v3550_v57, %v1931_v53  ;;  %v1939_v46 = vmul.f32 %v3552_v20, %v1935_v62 }
0x241a   :  { %v1956_v3 = vmul.f32 %v1946_v37, %v1938_v39  ;;  %v1957_v48 = vmul.f32 %v1953_v34, %v1939_v46 }
0x241c   :  { %1961 = vperm.xlu0 %3453, %v1956_v3  }
0x2420   :  { %1964 = vperm.xlu0 %3453, %v1957_v48  }
0x2424   :  { %1976 = vrot.lane.b32.xlu0 %v4250_v45, %s3660_s25 }
0x249b   :  { %v1962_v54 = vpop.permute.xlu0 %1961 }
0x249c   :  { %v1969_v58 = vrot.slane %v1962_v54, %v3816_v52  ;;  %v2783_v59 = vrot.slane %v1962_v54, %v2782_v16 }
0x249f   :  { %v1965_v56 = vpop.permute.xlu0 %1964 }
0x24a0   :  { %v1973_v33 = vrot.slane %v1965_v56, %v3816_v52  ;;  %v2787_v60 = vrot.slane %v1965_v56, %v2782_v16 }
0x24a2   :  { %v2788_v61 = vsel %vm224_vm2, %v2787_v60, %v2783_v59  ;;  %v1974_v63 = vsel %vm224_vm2, %v1973_v33, %v1969_v58 }
0x24a3   :  { %v1977_v1 = vpop.permute.xlu0 %1976  ;;  %v4312_v45 = vsel %vm2819_vm12, %v4223_v40, %v2788_v61 }
0x24a4   :  { %v1979_v2 = vsel %vm321_vm5, %v1974_v63, %v1977_v1 }
0x24a5   :  { %3232 = vmatmul.mubr.msk.f32.vlgmr.msra.gmra.mrb[10].mxu0 %vm329_vm6, %v1979_v2 }
0x24a6   :  { %3408 = vmatpush3.bf16.msra.mxu0 %v3727_v6  ;;  %3250 = vmatprep.mubr.msk.f32.mxu0 %vm3654_vm0, %v3655_v8 }
0x24a7   :  { %3409 = vmatprep.subr.bf16.mxu0 %v3653_v5 }
0x24aa   :  { %3411 = vmatpush3.bf16.msra.mxu0 %v3741_v10 }
0x24ab   :  { %3412 = vmatprep.subr.bf16.mxu0 %v3653_v5 }
0x24ae   :  { %3414 = vmatpush3.bf16.msra.mxu0 %v3761_v17 }
0x24af   :  { %3415 = vmatprep.subr.bf16.mxu0 %v3653_v5 }
0x24b2   :  { %3417 = vmatpush3.bf16.msra.mxu0 %v3772_v21 }
0x24b3   :  { %3436 = vmatprep.subr.bf16.mxu0 %v3653_v5 }
0x2578   :  { %v2049_v40 = vpop.f32.mrb[10].mxu0 }
0x2579   :  { %v2050_v57 = vadd.f32 %v4240_v47, %v2049_v40  ;;  %v3233_v20 = vpop.f32.mrb[11].mxu0 }
0x257b   :  { %3555 = vtanh.f32 %v2050_v57  ;;  %v2912_v23 = vmul.f32 -1.442695, %v2050_v57 }
0x257d   :  { %3557 = vpow2.f32 %v2912_v23 }
0x2585   :  { %v3556_v22 = vpop.eup %3555 }
0x2586   :  { %2062 = vrot.lane.b32.xlu0 %v3556_v22, %s3658_s1 }
0x2587   :  { %v3558_v42 = vpop.eup %3557 }
0x2588   :  { %v2056_v24 = vadd.f32 1.0, %v3558_v42 }
0x258a   :  { %3559 = vrcp.f32 %v2056_v24 }
0x2594   :  { %v3560_v25 = vpop.eup %3559 }
0x2595   :  { %v2060_v44 = vmul.f32 %v3560_v25, %v4246_v0 }
0x25f8   :  { %v2063_v29 = vpop.permute.xlu0 %2062 }
0x25f9   :  { %v2065_v30 = vmul.f32 %v3560_v25, %v2063_v29 }
0x25fb   :  { %2067 = vrot.lane.b32.xlu0 %v2065_v30, %s3659_s24 }
0x266d   :  { %v2068_v41 = vpop.permute.xlu0 %2067 }
0x266e   :  { %v4330_v31 = vadd.f32 %v2068_v41, %v2060_v44 }
0x2670   :  { %3561 = vtanh.f32 %v4330_v31 }
0x267a   :  { %v3562_v35 = vpop.eup %3561 }
0x267b   :  { %2073 = vrot.lane.b32.xlu1 %v3562_v35, %s3658_s1 }
0x26ed   :  { %v2074_v37 = vpop.permute.xlu1 %2073 }
0x26ee   :  { %v4334_v53 = vmul.f32 %v3560_v25, %v2074_v37 }
0x26f0   :  { %2078 = vrot.lane.b32.xlu0 %v4334_v53, %s3659_s24 }
0x2762   :  { %v2079_v62 = vpop.permute.xlu0 %2078 }
0x2763   :  { %v2081_v39 = vsel %vm435_vm7, %v2079_v62, %v4330_v31  ;;  %v2271_v62 = vsub.s32 6, %v3735_v9 }
0x2764   :  { %3251 = vmatmul.mubr.msk.f32.vlgmr.msra.gmra.mrb[12].mxu0 %vm75_vm8, %v2081_v39 }
0x2765   :  { %3438 = vmatpush3.bf16.msra.mxu0 %v3850_v26  ;;  %3295 = vmatprep.mubr.msk.f32.mxu0 %vm3654_vm0, %v3655_v8  ;;  %v2272_v39 = vrot.slane %v4199_v55, %v2271_v62 }
0x2766   :  { %3439 = vmatprep.subr.bf16.mxu0 %v3653_v5 }
0x2769   :  { %3441 = vmatpush3.bf16.msra.mxu0 %v3864_v43 }
0x276a   :  { %3293 = vmatprep.subr.mxu0 %v3655_v8 }
0x276d   :  { %3294 = vmatpush3.msk.msra.mxu0 %vm333_vm4, %v4269_v13 }
0x2837   :  { %v2151_v0 = vpop.f32.mrb[12].mxu0 }
0x2838   :  { %v2152_v3 = vadd.f32 %v4168_v27, %v2151_v0  ;;  %v3252_v46 = vpop.f32.mrb[13].mxu0  ;;  %v2279_v0 = vrot.slane %v4205_v11, %v2271_v62 }
0x283a   :  { %v2162_v34 = vrot.slane %v2152_v3, %v3786_v28 }
0x283c   :  { %v2163_v48 = vcombine.high %v2162_v34, %v2162_v34  ;;  %v2170_v26 = vrot.slane %v2162_v34, %v3786_v28 }
0x283e   :  { %v2177_v50 = vrot.slane %v2163_v48, %v3786_v28  ;;  %v2181_v54 = vrot.slane %v2170_v26, %v3754_v14 }
0x2840   :  { %v2185_v43 = vrot.slane %v2177_v50, %v3754_v14  ;;  %v2188_v16 = vadd.f32 %v2181_v54, %v3789_v32 }
0x2842   :  { %v2189_v56 = vadd.f32 %v2185_v43, %v3795_v38  ;;  %3563 = vtanh.f32 %v2188_v16 }
0x2844   :  { %3565 = vtanh.f32 %v2189_v56 }
0x284c   :  { %v3564_v13 = vpop.eup %3563 }
0x284d   :  { %v2192_v58 = vmul.f32 %v4181_v4, %v3564_v13 }
0x284e   :  { %v3566_v59 = vpop.eup %3565 }
0x284f   :  { %v2194_v33 = vsel %vm194_vm1, %v2192_v58, 0.0  ;;  %v2193_v60 = vmul.f32 %v4181_v4, %v3566_v59 }
0x2850   :  { %2195 = vadd.xlane.f32.xlu0 %v2194_v33 }
0x2851   :  { %v2197_v61 = vsel %vm194_vm1, %v2193_v60, 0.0 }
0x2852   :  { %2198 = vadd.xlane.f32.xlu1 %v2197_v61 }
0x28dd   :  { %v2196_v63 = vpop.xlane.xlu0 %2195 }
0x28de   :  { %v2200_v1 = vadd.f32 %v2196_v63, %v3812_v51  ;;  %v2790_v63 = vadd.s32 4294967272, %v3810_v49 }
0x28df   :  { %v2199_v2 = vpop.xlane.xlu1 %2198 }
0x28e0   :  { %v2201_v40 = vadd.f32 %v2199_v2, %v3812_v51  ;;  %v2207_v57 = vrot.slane %v2200_v1, %v3816_v52  ;;  %v2793_v2 = vsub.s32 %v2790_v63, %v3735_v9 }
0x28e2   :  { %v2211_v20 = vrot.slane %v2201_v40, %v3816_v52 }
0x28e4   :  { %v2212_v22 = vsel %vm224_vm2, %v2211_v20, %v2207_v57 }
0x28e5   :  { %v2214_v23 = vsel %vm227_vm3, %v2212_v22, -inf }
0x28e6   :  { %2215 = vmax.xlane.f32.xlu0 %v2214_v23 }
0x2973   :  { %v2216_v42 = vpop.xlane.xlu0 %2215 }
0x2974   :  { %v2221_v24 = vrot.slane %v2216_v42, %v3754_v14  ;;  %v2225_v25 = vrot.slane %v2216_v42, %v3757_v15 }
0x2976   :  { %v2228_v29 = vsub.f32 %v2200_v1, %v2221_v24  ;;  %v2229_v30 = vsub.f32 %v2201_v40, %v2225_v25 }
0x2978   :  { %v2230_v44 = vmul.f32 1.442695, %v2228_v29  ;;  %v2232_v41 = vmul.f32 1.442695, %v2229_v30 }
0x297a   :  { %3567 = vpow2.f32 %v2230_v44 }
0x297b   :  { %3569 = vpow2.f32 %v2232_v41 }
0x2984   :  { %v3568_v35 = vpop.eup %3567 }
0x2985   :  { %v3570_v37 = vpop.eup %3569  ;;  %2237 = vperm.xlu0 %3453, %v3568_v35  }
0x2986   :  { %2240 = vperm.xlu1 %3454, %v3570_v37  }
0x298a   :  { %2274 = vbcast.lane.b32.xlu1 %v2272_v39, 256 }
0x298e   :  { %2281 = vbcast.lane.b32.xlu1 %v2279_v0, 256 }
0x2a04   :  { %v2238_v3 = vpop.permute.xlu0 %2237 }
0x2a05   :  { %v2241_v46 = vpop.permute.xlu1 %2240  ;;  %v2245_v34 = vrot.slane %v2238_v3, %v3816_v52 }
0x2a06   :  { %v2249_v48 = vrot.slane %v2241_v46, %v3816_v52 }
0x2a08   :  { %v2250_v26 = vsel %vm224_vm2, %v2249_v48, %v2245_v34 }
0x2a09   :  { %v2252_v50 = vsel %vm227_vm3, %v2250_v26, 0.0  ;;  %v2275_v16 = vpop.permute.xlu1 %2274 }
0x2a0a   :  { %2253 = vadd.xlane.f32.xlu0 %v2252_v50 }
0x2a0d   :  { %v2282_v60 = vpop.permute.xlu1 %2281 }
0x2a97   :  { %v2254_v54 = vpop.xlane.xlu0 %2253 }
0x2a98   :  { %3571 = vrcp.f32 %v2254_v54 }
0x2aa2   :  { %v3572_v43 = vpop.eup %3571 }
0x2aa3   :  { %v2260_v56 = vrot.slane %v3572_v43, %v3754_v14  ;;  %v2264_v13 = vrot.slane %v3572_v43, %v3757_v15 }
0x2aa5   :  { %v2267_v58 = vmul.f32 %v3568_v35, %v2260_v56  ;;  %v2268_v33 = vmul.f32 %v3570_v37, %v2264_v13 }
0x2aa7   :  { %v2285_v59 = vmul.f32 %v2275_v16, %v2267_v58  ;;  %v2286_v61 = vmul.f32 %v2282_v60, %v2268_v33 }
0x2aa9   :  { %2290 = vperm.xlu1 %3454, %v2285_v59  }
0x2aad   :  { %2293 = vperm.xlu1 %3454, %v2286_v61  }
0x2ab1   :  { %2305 = vrot.lane.b32.xlu1 %v4334_v53, %s3660_s25 }
0x2b28   :  { %v2291_v1 = vpop.permute.xlu1 %2290 }
0x2b29   :  { %v2298_v57 = vrot.slane %v2291_v1, %v3816_v52  ;;  %v2794_v20 = vrot.slane %v2291_v1, %v2793_v2 }
0x2b2c   :  { %v2294_v40 = vpop.permute.xlu1 %2293 }
0x2b2d   :  { %v2302_v22 = vrot.slane %v2294_v40, %v3816_v52  ;;  %v2798_v23 = vrot.slane %v2294_v40, %v2793_v2 }
0x2b2f   :  { %v2303_v42 = vsel %vm224_vm2, %v2302_v22, %v2298_v57  ;;  %v2799_v24 = vsel %vm224_vm2, %v2798_v23, %v2794_v20 }
0x2b30   :  { %v2306_v25 = vpop.permute.xlu1 %2305  ;;  %v4387_v29 = vsel %vm2821_vm13, %v4312_v45, %v2799_v24 }
0x2b31   :  { %v2308_v30 = vsel %vm321_vm5, %v2303_v42, %v2306_v25 }
0x2b32   :  { %3264 = vmatmul.mubr.msk.f32.vlgmr.msra.gmra.mrb[12].mxu1 %vm329_vm6, %v2308_v30 }
0x2b33   :  { %3426 = vmatpush3.bf16.msra.mxu1 %v3727_v6  ;;  %3282 = vmatprep.mubr.msk.f32.mxu1 %vm3654_vm0, %v3655_v8 }
0x2b34   :  { %3427 = vmatprep.subr.bf16.mxu1 %v3653_v5 }
0x2b37   :  { %3429 = vmatpush3.bf16.msra.mxu1 %v3741_v10 }
0x2b38   :  { %3430 = vmatprep.subr.bf16.mxu1 %v3653_v5 }
0x2b3b   :  { %3432 = vmatpush3.bf16.msra.mxu1 %v3761_v17 }
0x2b3c   :  { %3433 = vmatprep.subr.bf16.mxu1 %v3653_v5 }
0x2b3f   :  { %3435 = vmatpush3.bf16.msra.mxu1 %v3772_v21 }
0x2c05   :  { %v2378_v45 = vpop.f32.mrb[12].mxu1 }
0x2c06   :  { %v2379_v44 = vadd.f32 %v4240_v47, %v2378_v45  ;;  %v3265_v41 = vpop.f32.mrb[13].mxu1 }
0x2c08   :  { %3573 = vtanh.f32 %v2379_v44  ;;  %v2916_v8 = vmul.f32 -1.442695, %v2379_v44 }
0x2c0a   :  { %3575 = vpow2.f32 %v2916_v8 }
0x2c12   :  { %v3574_v6 = vpop.eup %3573 }
0x2c13   :  { %2391 = vrot.lane.b32.xlu1 %v3574_v6, %s3658_s1  ;;  %v2600_v6 = vsub.s32 7, %v3735_v9 }
0x2c14   :  { %v3576_v35 = vpop.eup %3575 }
0x2c15   :  { %v2385_v10 = vadd.f32 1.0, %v3576_v35  ;;  %v2601_v8 = vrot.slane %v4199_v55, %v2600_v6  ;;  %v2608_v35 = vrot.slane %v4205_v11, %v2600_v6 }
0x2c17   :  { %3577 = vrcp.f32 %v2385_v10 }
0x2c21   :  { %v3578_v37 = vpop.eup %3577 }
0x2c22   :  { %v2389_v5 = vmul.f32 %v3578_v37, %v4330_v31 }
0x2c85   :  { %v2392_v62 = vpop.permute.xlu1 %2391 }
0x2c86   :  { %v2394_v17 = vmul.f32 %v3578_v37, %v2392_v62 }
0x2c88   :  { %2396 = vrot.lane.b32.xlu1 %v2394_v17, %s3659_s24 }
0x2cfa   :  { %v2397_v21 = vpop.permute.xlu1 %2396 }
0x2cfb   :  { %v4404_v39 = vadd.f32 %v2397_v21, %v2389_v5 }
0x2cfd   :  { %3579 = vtanh.f32 %v4404_v39 }
0x2d07   :  { %v3580_v0 = vpop.eup %3579 }
0x2d08   :  { %2402 = vrot.lane.b32.xlu0 %v3580_v0, %s3658_s1 }
0x2d7a   :  { %v2403_v3 = vpop.permute.xlu0 %2402 }
0x2d7b   :  { %v4408_v46 = vmul.f32 %v3578_v37, %v2403_v3 }
0x2d7d   :  { %2407 = vrot.lane.b32.xlu1 %v4408_v46, %s3659_s24 }
0x2def   :  { %v2408_v34 = vpop.permute.xlu1 %2407 }
0x2df0   :  { %v2410_v48 = vsel %vm435_vm7, %v2408_v34, %v4404_v39 }
0x2df1   :  { %3283 = vmatmul.mubr.msk.f32.vlgmr.msra.gmra.mrb[14].mxu1 %vm75_vm8, %v2410_v48 }
0x2ec4   :  { %v2480_v31 = vpop.f32.mrb[14].mxu1 }
0x2ec5   :  { %v2481_v26 = vadd.f32 %v4168_v27, %v2480_v31  ;;  %v3284_v50 = vpop.f32.mrb[15].mxu1 }
0x2ec7   :  { %v2491_v54 = vrot.slane %v2481_v26, %v3786_v28 }
0x2ec9   :  { %v2492_v43 = vcombine.high %v2491_v54, %v2491_v54  ;;  %v2499_v16 = vrot.slane %v2491_v54, %v3786_v28 }
0x2ecb   :  { %v2506_v56 = vrot.slane %v2492_v43, %v3786_v28  ;;  %v2510_v13 = vrot.slane %v2499_v16, %v3754_v14  ;;  %v2801_v43 = vadd.s32 4294967268, %v3810_v49 }
0x2ecd   :  { %v2514_v58 = vrot.slane %v2506_v56, %v3754_v14  ;;  %v2517_v59 = vadd.f32 %v2510_v13, %v3789_v32  ;;  %v2804_v56 = vsub.s32 %v2801_v43, %v3735_v9 }
0x2ecf   :  { %v2518_v33 = vadd.f32 %v2514_v58, %v3795_v38  ;;  %3581 = vtanh.f32 %v2517_v59 }
0x2ed1   :  { %3583 = vtanh.f32 %v2518_v33 }
0x2ed9   :  { %v3582_v60 = vpop.eup %3581 }
0x2eda   :  { %v2521_v27 = vmul.f32 %v4181_v4, %v3582_v60 }
0x2edb   :  { %v3584_v61 = vpop.eup %3583 }
0x2edc   :  { %v2523_v63 = vsel %vm194_vm1, %v2521_v27, 0.0  ;;  %v2522_v1 = vmul.f32 %v4181_v4, %v3584_v61 }
0x2edd   :  { %2524 = vadd.xlane.f32.xlu1 %v2523_v63 }
0x2ede   :  { %v2526_v28 = vsel %vm194_vm1, %v2522_v1, 0.0 }
0x2edf   :  { %2527 = vadd.xlane.f32.xlu0 %v2526_v28 }
0x2f6a   :  { %v2525_v2 = vpop.xlane.xlu1 %2524 }
0x2f6b   :  { %v2529_v40 = vadd.f32 %v2525_v2, %v3812_v51 }
0x2f6c   :  { %v2528_v32 = vpop.xlane.xlu0 %2527 }
0x2f6d   :  { %v2530_v38 = vadd.f32 %v2528_v32, %v3812_v51  ;;  %v2536_v57 = vrot.slane %v2529_v40, %v3816_v52 }
0x2f6f   :  { %v2540_v20 = vrot.slane %v2530_v38, %v3816_v52 }
0x2f71   :  { %v2541_v22 = vsel %vm224_vm2, %v2540_v20, %v2536_v57 }
0x2f72   :  { %v2543_v23 = vsel %vm227_vm3, %v2541_v22, -inf }
0x2f73   :  { %2544 = vmax.xlane.f32.xlu1 %v2543_v23 }
0x3000   :  { %v2545_v4 = vpop.xlane.xlu1 %2544 }
0x3001   :  { %v2550_v42 = vrot.slane %v2545_v4, %v3754_v14  ;;  %v2554_v24 = vrot.slane %v2545_v4, %v3757_v15 }
0x3003   :  { %v2557_v25 = vsub.f32 %v2529_v40, %v2550_v42  ;;  %v2558_v30 = vsub.f32 %v2530_v38, %v2554_v24 }
0x3005   :  { %v2559_v45 = vmul.f32 1.442695, %v2557_v25  ;;  %v2561_v44 = vmul.f32 1.442695, %v2558_v30 }
0x3007   :  { %3585 = vpow2.f32 %v2559_v45 }
0x3008   :  { %3587 = vpow2.f32 %v2561_v44 }
0x3011   :  { %v3586_v51 = vpop.eup %3585 }
0x3012   :  { %v3588_v41 = vpop.eup %3587  ;;  %2566 = vperm.xlu1 %3454, %v3586_v51  }
0x3013   :  { %2569 = vperm.xlu0 %3453, %v3588_v41  }
0x3017   :  { %2603 = vbcast.lane.b32.xlu0 %v2601_v8, 256 }
0x301b   :  { %2610 = vbcast.lane.b32.xlu0 %v2608_v35, 256 }
0x3091   :  { %v2567_v10 = vpop.permute.xlu1 %2566 }
0x3092   :  { %v2570_v37 = vpop.permute.xlu0 %2569  ;;  %v2574_v62 = vrot.slane %v2567_v10, %v3816_v52 }
0x3093   :  { %v2578_v17 = vrot.slane %v2570_v37, %v3816_v52 }
0x3095   :  { %v2579_v5 = vsel %vm224_vm2, %v2578_v17, %v2574_v62 }
0x3096   :  { %v2581_v21 = vsel %vm227_vm3, %v2579_v5, 0.0  ;;  %v2604_v34 = vpop.permute.xlu0 %2603 }
0x3097   :  { %2582 = vadd.xlane.f32.xlu1 %v2581_v21 }
0x309a   :  { %v2611_v50 = vpop.permute.xlu0 %2610 }
0x3124   :  { %v2583_v0 = vpop.xlane.xlu1 %2582 }
0x3125   :  { %3589 = vrcp.f32 %v2583_v0 }
0x312f   :  { %v3590_v3 = vpop.eup %3589 }
0x3130   :  { %v2589_v55 = vrot.slane %v3590_v3, %v3754_v14  ;;  %v2593_v11 = vrot.slane %v3590_v3, %v3757_v15 }
0x3132   :  { %v2596_v48 = vmul.f32 %v3586_v51, %v2589_v55  ;;  %v2597_v26 = vmul.f32 %v3588_v41, %v2593_v11 }
0x3134   :  { %v2614_v31 = vmul.f32 %v2604_v34, %v2596_v48  ;;  %v2615_v54 = vmul.f32 %v2611_v50, %v2597_v26 }
0x3136   :  { %2619 = vperm.xlu0 %3453, %v2614_v31  }
0x313a   :  { %2622 = vperm.xlu0 %3453, %v2615_v54  }
0x313e   :  { %2634 = vrot.lane.b32.xlu0 %v4408_v46, %s3660_s25 }
0x31b5   :  { %v2620_v16 = vpop.permute.xlu0 %2619 }
0x31b6   :  { %v2627_v14 = vrot.slane %v2620_v16, %v3816_v52  ;;  %v2805_v15 = vrot.slane %v2620_v16, %v2804_v56 }
0x31b9   :  { %v2623_v13 = vpop.permute.xlu0 %2622 }
0x31ba   :  { %v2631_v58 = vrot.slane %v2623_v13, %v3816_v52  ;;  %v2809_v59 = vrot.slane %v2623_v13, %v2804_v56 }
0x31bc   :  { %v2632_v33 = vsel %vm224_vm2, %v2631_v58, %v2627_v14  ;;  %v2810_v60 = vsel %vm224_vm2, %v2809_v59, %v2805_v15 }
0x31bd   :  { %v2635_v27 = vpop.permute.xlu0 %2634  ;;  %v2824_v61 = vsel %vm2823_vm14, %v4387_v29, %v2810_v60 }
0x31be   :  { %v2637_v49 = vsel %vm321_vm5, %v2632_v33, %v2635_v27  ;;  %2826 = vst.msk [vmem:[#allocation3] sm:$0x3] %vm2825_vm15, %v2824_v61 }
0x31bf   :  { %3296 = vmatmul.mubr.msk.f32.vlgmr.msra.gmra.mrb[14].mxu0 %vm329_vm6, %v2637_v49 }
0x3292   :  { %v2707_v9 = vpop.f32.mrb[14].mxu0 }
0x3293   :  { %v2708_v63 = vadd.f32 %v4240_v47, %v2707_v9  ;;  %v3297_v1 = vpop.f32.mrb[15].mxu0 }
0x3295   :  { %3591 = vtanh.f32 %v2708_v63  ;;  %v2920_v28 = vmul.f32 -1.442695, %v2708_v63 }
0x3297   :  { %3593 = vpow2.f32 %v2920_v28 }
0x329f   :  { %v3592_v52 = vpop.eup %3591 }
0x32a0   :  { %2720 = vrot.lane.b32.xlu0 %v3592_v52, %s3658_s1 }
0x32a1   :  { %v3594_v2 = vpop.eup %3593 }
0x32a2   :  { %v2714_v40 = vadd.f32 1.0, %v3594_v2 }
0x32a4   :  { %3595 = vrcp.f32 %v2714_v40 }
0x32ae   :  { %v3596_v32 = vpop.eup %3595 }
0x32af   :  { %v2718_v47 = vmul.f32 %v3596_v32, %v4404_v39 }
0x3312   :  { %v2721_v29 = vpop.permute.xlu0 %2720 }
0x3313   :  { %v2723_v38 = vmul.f32 %v3596_v32, %v2721_v29 }
0x3315   :  { %2725 = vrot.lane.b32.xlu0 %v2723_v38, %s3659_s24 }
0x3319   :  { %2827 = vrot.lane.b32.xlu0 %v3991_v19, %s3658_s1 }
0x331d   :  { %2833 = vrot.lane.b32.xlu0 %v4334_v53, %s3658_s1 }
0x3321   :  { %2830 = vrot.lane.b32.xlu0 %v4066_v36, %s3661_s6 }
0x3325   :  { %2836 = vrot.lane.b32.xlu0 %v4408_v46, %s3661_s6 }
0x3387   :  { %v2726_v57 = vpop.permute.xlu0 %2725 }
0x3388   :  { %v2728_v20 = vadd.f32 %v2726_v57, %v2718_v47 }
0x338a   :  { %3597 = vtanh.f32 %v2728_v20 }
0x338b   :  { %3616 = shalt.err (!%p3613_p4)
}
0x338c   :  { %s3617_s5 = scalar_lea.hbm %s4505_s8, 32 }
0x338d   :  { %p3618_p5 = scmp.ne.s32.totalorder %s4505_s8, %s3617_s5  ;;  %p3621_p6 = scmp.lt.u32.totalorder %s3617_s5, %s4505_s8 }
0x338f   :  { %p3623_p7 = pnand %p3621_p6, %p3618_p5 }
0x3391   :  { %3626 = shalt.err (!%p3623_p7)
}
0x3392   :  { %2867 = dma.vmem_to_hbm [thread:$0]  %s2865_s13, 32, %s4505_s8, [#allocation4]   ;;  %v2828_v36 = vpop.permute.xlu0 %2827  ;;  %vm2841_vm0 = vcmask 785408  }
0x3393   :  { %v2839_v46 = vsel %vm435_vm7, %v3915_v18, %v2828_v36  ;;  %s3663_s23 = smov [#allocation5]  }
0x3394   :  { %v3598_v19 = vpop.eup %3597  ;;  %s2874_s8 = sshll.u32 %s3663_s23, 4  ;;  %s2875_s8 = int_to_ptr.vmem [resolvable:$true] %s2874_s8 }
0x3395   :  { %2731 = vrot.lane.b32.xlu1 %v3598_v19, %s3658_s1  ;;  %s3627_s1 = scalar_lea.vmem %s2875_s8, 64  ;;  %p3632_p9 = scmp.lt.s32.totalorder %s2875_s8, %s2875_s8 }
0x3396   :  { %v2834_v53 = vpop.permute.xlu0 %2833  ;;  %p3628_p8 = scmp.ne.s32.totalorder %s2875_s8, %s3627_s1  ;;  %p3633_p10 = scmp.lt.s32.totalorder %s3627_s1, %s3627_s1 }
0x3397   :  { %v2843_v42 = vsel %vm435_vm7, %v4254_v12, %v2834_v53 }
0x3398   :  { %p3634_p11 = por %p3633_p10, %p3632_p9 }
0x339a   :  { %v2831_v39 = vpop.permute.xlu0 %2830  ;;  %p3635_p12 = pnand %p3634_p11, %p3628_p8 }
0x339b   :  { %v2840_v23 = vsel %vm75_vm8, %v2839_v46, %v2831_v39 }
0x339c   :  { %v2842_v30 = vsel %vm2841_vm0, %v2840_v23, %v4149_v7 }
0x339e   :  { %v2837_v22 = vpop.permute.xlu0 %2836 }
0x339f   :  { %v2844_v25 = vsel %vm75_vm8, %v2843_v42, %v2837_v22 }
0x3407   :  { %v2732_v4 = vpop.permute.xlu1 %2731 }
0x3408   :  { %v2734_v24 = vmul.f32 %v3596_v32, %v2732_v4 }
0x340a   :  { %v2845_v45 = vsel %vm2841_vm0, %v2844_v25, %v2734_v24 }
0x340b   :  { %v2848_v44 = vcombine.low %v2842_v30, %v2845_v45 }
0x340d   :  { %2921 = vst.sshfl [vmem:[#allocation5] sm:$0x33 pattern:$0x76325410] %v2848_v44 }
0x340e   :  { %3638 = shalt.err (!%p3635_p12)
}
0x340f   :  { %s3639_s26 = scalar_lea.hbm %s4506_s9, 64 }
0x3410   :  { %p3640_p13 = scmp.ne.s32.totalorder %s4506_s9, %s3639_s26  ;;  %p3643_p0 = scmp.lt.u32.totalorder %s3639_s26, %s4506_s9 }
0x3412   :  { %p3645_p1 = pnand %p3643_p0, %p3640_p13 }
0x3414   :  { %3648 = shalt.err (!%p3645_p1)
}
0x3415   :  { %2877 = dma.vmem_to_hbm [thread:$0]  %s2875_s8, 64, %s4506_s9, [#allocation6]  }
0x3416   :  { %3649 = dma.done.wait [#allocation4], 32  }
0x3417   :  { %3650 = vsyncadd [#allocation4], 4294967264 }
0x3418   :  { %3651 = dma.done.wait [#allocation6], 64  }
0x3419   :  { %3652 = vsyncadd [#allocation6], 4294967232 }
0x341a   :  { %2884 = vsyncpa [#allocation4], 1 }
0x341b   :  { %2885 = vsyncpa [#allocation6], 1 }

</bundles_post_ra>
